<compile_context>
chip_gen: v6e
topology: v6e:2x2x1
jax: 0.10.0
libtpu: 0.0.40
codegen_flags: <defaults>
</compile_context>

<pallas_src>
import functools

import jax
import jax.numpy as jnp
from jax.experimental import pallas as pl
from jax.experimental.pallas import tpu as pltpu


def _round_up(x, m):
    return (x + m - 1) // m * m


def _vae_kernel(x_ref, eps_ref,
                we0_ref, be0_ref,        # encoder L0 (in_pad -> H) + ReLU
                wmv_ref, bmv_ref,        # fused [means | log_var] (H -> 2*lat_pad)
                wd0_ref, bd0_ref,        # decoder L0 (lat_pad -> H) + ReLU
                wd1_ref, bd1_ref,        # decoder L1 (H -> out_pad) + Sigmoid
                recon_ref, means_ref, logvar_ref, z_ref,
                *, lat_pad):
    x = x_ref[...]                                            # (TB, in_pad) f32

    # ---- Encoder MLP: Linear + ReLU (bf16 MXU inputs, f32 accumulation) ----
    h = jnp.dot(x.astype(jnp.bfloat16), we0_ref[...],
                preferred_element_type=jnp.float32) + be0_ref[...]
    h = jnp.maximum(h, 0.0)

    # ---- Fused means|log_var projection (one lane-dense matmul) ----
    mv = jnp.dot(h.astype(jnp.bfloat16), wmv_ref[...],
                 preferred_element_type=jnp.float32) + bmv_ref[...]
    means = mv[:, :lat_pad]                                   # 128-aligned split
    log_var = mv[:, lat_pad:]

    # ---- Reparameterize: z = mu + eps * exp(0.5 * log_var)  (f32 elementwise) ----
    # Padded lanes: means=0, log_var=0 -> std=1, eps=0 -> z padded lanes stay 0.
    std = jnp.exp(0.5 * log_var)
    z = means + eps_ref[...] * std

    # ---- Decoder MLP: Linear + ReLU, Linear + Sigmoid ----
    d = jnp.dot(z.astype(jnp.bfloat16), wd0_ref[...],
                preferred_element_type=jnp.float32) + bd0_ref[...]
    d = jnp.maximum(d, 0.0)
    logits = jnp.dot(d.astype(jnp.bfloat16), wd1_ref[...],
                     preferred_element_type=jnp.float32) + bd1_ref[...]
    # sigmoid: exp + approx reciprocal both go to the EUP slot (VALU stays free).
    recon = pl.reciprocal(1.0 + jnp.exp(-logits), approx=True)

    recon_ref[...] = recon
    means_ref[...] = means
    logvar_ref[...] = log_var
    z_ref[...] = z


def vae_forward(x, eps, params, *, block_batch=512):
    """Full VAE forward in one batch-tiled Pallas kernel.

    Returns (recon_x, means, log_var, z), mirroring VAE.forward.
    """
    if x.ndim > 2:
        x = x.reshape(-1, 28 * 28)
    x = x.astype(jnp.float32)

    B, in_dim = x.shape
    hid = params["we0"].shape[1]
    latent = params["wm"].shape[1]
    dec_hid = params["wd0"].shape[1]
    out_dim = params["wd1"].shape[1]

    in_pad = _round_up(in_dim, 128)        # 784 -> 896 (lane-dense loads)
    out_pad = _round_up(out_dim, 128)      # 784 -> 896 (unmasked vst)
    lat_pad = _round_up(latent, 128)       # 16  -> 128 (dense latent stores)

    # Batch tile: multiple of 8 (f32 sublane); safe on v7x's 64 MiB VMEM too.
    tb = _round_up(min(block_batch, _round_up(B, 8)), 8)
    b_pad = _round_up(B, tb)
    grid = (b_pad // tb,)

    # ---- Pad / pack / pre-cast parameters (weights bf16 for MXU, biases f32) ----
    we0 = jnp.zeros((in_pad, hid), jnp.bfloat16).at[:in_dim].set(
        params["we0"].astype(jnp.bfloat16))
    be0 = params["be0"].astype(jnp.float32)

    wmv = jnp.zeros((hid, 2 * lat_pad), jnp.bfloat16)
    wmv = wmv.at[:, :latent].set(params["wm"].astype(jnp.bfloat16))
    wmv = wmv.at[:, lat_pad:lat_pad + latent].set(params["wv"].astype(jnp.bfloat16))
    bmv = jnp.zeros((1, 2 * lat_pad), jnp.float32)
    bmv = bmv.at[:, :latent].set(params["bm"].astype(jnp.float32))
    bmv = bmv.at[:, lat_pad:lat_pad + latent].set(params["bv"].astype(jnp.float32))

    wd0 = jnp.zeros((lat_pad, dec_hid), jnp.bfloat16).at[:latent].set(
        params["wd0"].astype(jnp.bfloat16))
    bd0 = params["bd0"].astype(jnp.float32)

    wd1 = jnp.zeros((dec_hid, out_pad), jnp.bfloat16).at[:, :out_dim].set(
        params["wd1"].astype(jnp.bfloat16))
    bd1 = jnp.zeros((1, out_pad), jnp.float32).at[:, :out_dim].set(
        params["bd1"].astype(jnp.float32))

    # ---- Pad activations: rows to b_pad, features/latent to 128-lane multiples ----
    x_p = jnp.zeros((b_pad, in_pad), jnp.float32).at[:B, :in_dim].set(x)
    eps_p = jnp.zeros((b_pad, lat_pad), jnp.float32).at[:B, :latent].set(
        eps.astype(jnp.float32))

    def batch_spec(cols):
        return pl.BlockSpec((tb, cols), lambda i: (i, 0))

    def resident(arr):
        return pl.BlockSpec(arr.shape, lambda i: (0, 0))

    out_shapes = (
        jax.ShapeDtypeStruct((b_pad, out_pad), jnp.float32),   # recon_x (padded)
        jax.ShapeDtypeStruct((b_pad, lat_pad), jnp.float32),   # means   (padded)
        jax.ShapeDtypeStruct((b_pad, lat_pad), jnp.float32),   # log_var (padded)
        jax.ShapeDtypeStruct((b_pad, lat_pad), jnp.float32),   # z       (padded)
    )

    flops = 2 * b_pad * (in_pad * hid + hid * 2 * lat_pad
                         + lat_pad * dec_hid + dec_hid * out_pad)
    transcendentals = b_pad * (out_pad + lat_pad)
    weight_bytes = sum(int(a.size) * a.dtype.itemsize
                       for a in (we0, be0, wmv, bmv, wd0, bd0, wd1, bd1))
    bytes_accessed = (b_pad * (in_pad + lat_pad) * 4          # x, eps in
                      + b_pad * (out_pad + 3 * lat_pad) * 4   # outputs
                      + weight_bytes)

    kernel = functools.partial(_vae_kernel, lat_pad=lat_pad)

    recon_p, means_p, logvar_p, z_p = pl.pallas_call(
        kernel,
        out_shape=out_shapes,
        grid=grid,
        in_specs=[
            batch_spec(in_pad),       # x
            batch_spec(lat_pad),      # eps
            resident(we0), resident(be0),
            resident(wmv), resident(bmv),
            resident(wd0), resident(bd0),
            resident(wd1), resident(bd1),
        ],
        out_specs=(
            batch_spec(out_pad),
            batch_spec(lat_pad),
            batch_spec(lat_pad),
            batch_spec(lat_pad),
        ),
        compiler_params=pltpu.CompilerParams(
            dimension_semantics=("parallel",)),
        cost_estimate=pl.CostEstimate(
            flops=flops,
            transcendentals=transcendentals,
            bytes_accessed=bytes_accessed),
    )(x_p, eps_p, we0, be0, wmv, bmv, wd0, bd0, wd1, bd1)

    # Slice padding away outside the kernel (keeps in-kernel stores lane-dense).
    return (recon_p[:B, :out_dim],
            means_p[:B, :latent],
            logvar_p[:B, :latent],
            z_p[:B, :latent])


def _init_linear(key, in_size, out_size):
    """Matches torch.nn.Linear default init U(-1/sqrt(in), 1/sqrt(in)).

    Weight returned transposed to (in, out); bias as (1, out)."""
    kw, kb = jax.random.split(key)
    bound = 1.0 / jnp.sqrt(float(in_size))
    w = jax.random.uniform(kw, (in_size, out_size), jnp.float32, -bound, bound)
    b = jax.random.uniform(kb, (1, out_size), jnp.float32, -bound, bound)
    return w, b


def init_vae_params(key, encoder_layer_sizes, latent_size, decoder_layer_sizes):
    # conditional=False, num_labels=0 (VAE defaults)
    assert len(encoder_layer_sizes) == 2 and len(decoder_layer_sizes) == 2
    k = jax.random.split(key, 5)
    params = {}
    params["we0"], params["be0"] = _init_linear(k[0], encoder_layer_sizes[0], encoder_layer_sizes[1])
    params["wm"], params["bm"] = _init_linear(k[1], encoder_layer_sizes[1], latent_size)
    params["wv"], params["bv"] = _init_linear(k[2], encoder_layer_sizes[1], latent_size)
    params["wd0"], params["bd0"] = _init_linear(k[3], latent_size, decoder_layer_sizes[0])
    params["wd1"], params["bd1"] = _init_linear(k[4], decoder_layer_sizes[0], decoder_layer_sizes[1])
    return params


def _reference(x2d, eps, params):
    h = jnp.maximum(x2d @ params["we0"] + params["be0"], 0.0)
    means = h @ params["wm"] + params["bm"]
    logvar = h @ params["wv"] + params["bv"]
    z = means + eps * jnp.exp(0.5 * logvar)
    d = jnp.maximum(z @ params["wd0"] + params["bd0"], 0.0)
    recon = jax.nn.sigmoid(d @ params["wd1"] + params["bd1"])
    return recon, means, logvar, z


if __name__ == "__main__":
    encoder_layer_sizes = [784, 256]
    latent_size = 16
    decoder_layer_sizes = [256, 784]
    B = 2

    key = jax.random.PRNGKey(0)
    kx, keps, kp = jax.random.split(key, 3)

    # PyTorch NCHW image input; flattened inside vae_forward like x.view(-1, 784).
    x = jax.random.uniform(kx, (B, 1, 28, 28), jnp.float32)
    # eps corresponds to torch.randn_like(std) in reparameterize (passed in for determinism).
    eps = jax.random.normal(keps, (B, latent_size), jnp.float32)

    params = init_vae_params(kp, encoder_layer_sizes, latent_size, decoder_layer_sizes)

    recon_x, means, log_var, z = vae_forward(x, eps, params)
    jax.block_until_ready((recon_x, means, log_var, z))

    # Plain-JAX f32 reference; bf16 MXU inputs + approx reciprocal => ~3e-2 tolerance.
    x2d = x.reshape(B, 784)
    recon_ref, means_ref, logvar_ref, z_ref = _reference(x2d, eps, params)

    assert recon_x.shape == (B, 784) and means.shape == (B, latent_size)
    assert log_var.shape == (B, latent_size) and z.shape == (B, latent_size)
    assert jnp.allclose(recon_x, recon_ref, atol=3e-2, rtol=0)
    assert jnp.allclose(means, means_ref, atol=3e-2, rtol=0)
    assert jnp.allclose(log_var, logvar_ref, atol=3e-2, rtol=0)
    assert jnp.allclose(z, z_ref, atol=3e-2, rtol=0)

    # Exercise the multi-step grid / batch-padding path (grid > 1).
    B2 = 20
    kx2, keps2 = jax.random.split(jax.random.PRNGKey(1))
    x2 = jax.random.uniform(kx2, (B2, 1, 28, 28), jnp.float32)
    eps2 = jax.random.normal(keps2, (B2, latent_size), jnp.float32)
    r2, m2, lv2, z2 = vae_forward(x2, eps2, params, block_batch=8)
    jax.block_until_ready((r2, m2, lv2, z2))
    r2_ref, m2_ref, lv2_ref, z2_ref = _reference(x2.reshape(B2, 784), eps2, params)
    assert r2.shape == (B2, 784)
    assert jnp.allclose(r2, r2_ref, atol=3e-2, rtol=0)
    assert jnp.allclose(m2, m2_ref, atol=3e-2, rtol=0)
    assert jnp.allclose(lv2, lv2_ref, atol=3e-2, rtol=0)
    assert jnp.allclose(z2, z2_ref, atol=3e-2, rtol=0)

    print("KERNEL_OK")
</pallas_src>

<mosaic_0001>
module attributes {stable_mosaic.version = 11 : i64} {
  func.func @_vae_kernel(%arg0: i32, %arg1: memref<8x896xf32, #tpu.memory_space<vmem>>, %arg2: memref<8x128xf32, #tpu.memory_space<vmem>>, %arg3: memref<896x256xbf16, #tpu.memory_space<vmem>>, %arg4: memref<1x256xf32, #tpu.memory_space<vmem>>, %arg5: memref<256x256xbf16, #tpu.memory_space<vmem>>, %arg6: memref<1x256xf32, #tpu.memory_space<vmem>>, %arg7: memref<128x256xbf16, #tpu.memory_space<vmem>>, %arg8: memref<1x256xf32, #tpu.memory_space<vmem>>, %arg9: memref<256x896xbf16, #tpu.memory_space<vmem>>, %arg10: memref<1x896xf32, #tpu.memory_space<vmem>>, %arg11: memref<8x896xf32, #tpu.memory_space<vmem>>, %arg12: memref<8x128xf32, #tpu.memory_space<vmem>>, %arg13: memref<8x128xf32, #tpu.memory_space<vmem>>, %arg14: memref<8x128xf32, #tpu.memory_space<vmem>>) attributes {dimension_semantics = [#tpu.dimension_semantics<parallel>], iteration_bounds = array<i64: 1>, scalar_prefetch = 0 : i64, scratch_operands = 0 : i64, tpu.core_type = #tpu.core_type<tc>, window_params = [{transform_indices = @transform_0, window_bounds = array<i64: 8, 896>}, {transform_indices = @transform_1, window_bounds = array<i64: 8, 128>}, {pipeline_mode = #tpu.pipeline_mode<synchronous>, transform_indices = @transform_2, window_bounds = array<i64: 896, 256>}, {pipeline_mode = #tpu.pipeline_mode<synchronous>, transform_indices = @transform_3, window_bounds = array<i64: 1, 256>}, {pipeline_mode = #tpu.pipeline_mode<synchronous>, transform_indices = @transform_4, window_bounds = array<i64: 256, 256>}, {pipeline_mode = #tpu.pipeline_mode<synchronous>, transform_indices = @transform_5, window_bounds = array<i64: 1, 256>}, {pipeline_mode = #tpu.pipeline_mode<synchronous>, transform_indices = @transform_6, window_bounds = array<i64: 128, 256>}, {pipeline_mode = #tpu.pipeline_mode<synchronous>, transform_indices = @transform_7, window_bounds = array<i64: 1, 256>}, {pipeline_mode = #tpu.pipeline_mode<synchronous>, transform_indices = @transform_8, window_bounds = array<i64: 256, 896>}, {pipeline_mode = #tpu.pipeline_mode<synchronous>, transform_indices = @transform_9, window_bounds = array<i64: 1, 896>}, {transform_indices = @transform_10, window_bounds = array<i64: 8, 896>}, {transform_indices = @transform_11, window_bounds = array<i64: 8, 128>}, {transform_indices = @transform_12, window_bounds = array<i64: 8, 128>}, {transform_indices = @transform_13, window_bounds = array<i64: 8, 128>}]} {
    %c0 = arith.constant 0 : index
    %c0_0 = arith.constant 0 : index
    %0 = vector.load %arg1[%c0, %c0_0] : memref<8x896xf32, #tpu.memory_space<vmem>>, vector<8x896xf32>
    %1 = arith.truncf %0 : vector<8x896xf32> to vector<8x896xbf16>
    %c0_1 = arith.constant 0 : index
    %c0_2 = arith.constant 0 : index
    %2 = vector.load %arg3[%c0_1, %c0_2] : memref<896x256xbf16, #tpu.memory_space<vmem>>, vector<896x256xbf16>
    %cst = arith.constant dense<0.000000e+00> : vector<8x256xf32>
    %3 = tpu.matmul %1, %2, %cst {dimension_numbers = #tpu.dot_dimension_numbers<[1], [0], [0], [1], [0, 0, 1, 1], [], []>} : vector<8x896xbf16>, vector<896x256xbf16>, vector<8x256xf32> -> vector<8x256xf32>
    %c0_3 = arith.constant 0 : index
    %c0_4 = arith.constant 0 : index
    %4 = vector.load %arg4[%c0_3, %c0_4] : memref<1x256xf32, #tpu.memory_space<vmem>>, vector<1x256xf32>
    %5 = vector.broadcast %4 : vector<1x256xf32> to vector<8x256xf32>
    %6 = arith.addf %3, %5 : vector<8x256xf32>
    %cst_5 = arith.constant 0.000000e+00 : f32
    %7 = vector.broadcast %cst_5 : f32 to vector<8x256xf32>
    %8 = arith.maximumf %6, %7 : vector<8x256xf32>
    %9 = arith.truncf %8 : vector<8x256xf32> to vector<8x256xbf16>
    %c0_6 = arith.constant 0 : index
    %c0_7 = arith.constant 0 : index
    %10 = vector.load %arg5[%c0_6, %c0_7] : memref<256x256xbf16, #tpu.memory_space<vmem>>, vector<256x256xbf16>
    %cst_8 = arith.constant dense<0.000000e+00> : vector<8x256xf32>
    %11 = tpu.matmul %9, %10, %cst_8 {dimension_numbers = #tpu.dot_dimension_numbers<[1], [0], [0], [1], [0, 0, 1, 1], [], []>} : vector<8x256xbf16>, vector<256x256xbf16>, vector<8x256xf32> -> vector<8x256xf32>
    %c0_9 = arith.constant 0 : index
    %c0_10 = arith.constant 0 : index
    %12 = vector.load %arg6[%c0_9, %c0_10] : memref<1x256xf32, #tpu.memory_space<vmem>>, vector<1x256xf32>
    %13 = vector.broadcast %12 : vector<1x256xf32> to vector<8x256xf32>
    %14 = arith.addf %11, %13 : vector<8x256xf32>
    %15 = vector.extract_strided_slice %14 {offsets = [0, 0], sizes = [8, 128], strides = [1, 1]} : vector<8x256xf32> to vector<8x128xf32>
    %16 = vector.extract_strided_slice %14 {offsets = [0, 128], sizes = [8, 128], strides = [1, 1]} : vector<8x256xf32> to vector<8x128xf32>
    %cst_11 = arith.constant 5.000000e-01 : f32
    %17 = vector.broadcast %cst_11 : f32 to vector<8x128xf32>
    %18 = arith.mulf %17, %16 : vector<8x128xf32>
    %19 = math.exp %18 : vector<8x128xf32>
    %c0_12 = arith.constant 0 : index
    %c0_13 = arith.constant 0 : index
    %20 = vector.load %arg2[%c0_12, %c0_13] : memref<8x128xf32, #tpu.memory_space<vmem>>, vector<8x128xf32>
    %21 = arith.mulf %20, %19 : vector<8x128xf32>
    %22 = arith.addf %15, %21 : vector<8x128xf32>
    %23 = arith.truncf %22 : vector<8x128xf32> to vector<8x128xbf16>
    %c0_14 = arith.constant 0 : index
    %c0_15 = arith.constant 0 : index
    %24 = vector.load %arg7[%c0_14, %c0_15] : memref<128x256xbf16, #tpu.memory_space<vmem>>, vector<128x256xbf16>
    %cst_16 = arith.constant dense<0.000000e+00> : vector<8x256xf32>
    %25 = tpu.matmul %23, %24, %cst_16 {dimension_numbers = #tpu.dot_dimension_numbers<[1], [0], [0], [1], [0, 0, 1, 1], [], []>} : vector<8x128xbf16>, vector<128x256xbf16>, vector<8x256xf32> -> vector<8x256xf32>
    %c0_17 = arith.constant 0 : index
    %c0_18 = arith.constant 0 : index
    %26 = vector.load %arg8[%c0_17, %c0_18] : memref<1x256xf32, #tpu.memory_space<vmem>>, vector<1x256xf32>
    %27 = vector.broadcast %26 : vector<1x256xf32> to vector<8x256xf32>
    %28 = arith.addf %25, %27 : vector<8x256xf32>
    %cst_19 = arith.constant 0.000000e+00 : f32
    %29 = vector.broadcast %cst_19 : f32 to vector<8x256xf32>
    %30 = arith.maximumf %28, %29 : vector<8x256xf32>
    %31 = arith.truncf %30 : vector<8x256xf32> to vector<8x256xbf16>
    %c0_20 = arith.constant 0 : index
    %c0_21 = arith.constant 0 : index
    %32 = vector.load %arg9[%c0_20, %c0_21] : memref<256x896xbf16, #tpu.memory_space<vmem>>, vector<256x896xbf16>
    %cst_22 = arith.constant dense<0.000000e+00> : vector<8x896xf32>
    %33 = tpu.matmul %31, %32, %cst_22 {dimension_numbers = #tpu.dot_dimension_numbers<[1], [0], [0], [1], [0, 0, 1, 1], [], []>} : vector<8x256xbf16>, vector<256x896xbf16>, vector<8x896xf32> -> vector<8x896xf32>
    %c0_23 = arith.constant 0 : index
    %c0_24 = arith.constant 0 : index
    %34 = vector.load %arg10[%c0_23, %c0_24] : memref<1x896xf32, #tpu.memory_space<vmem>>, vector<1x896xf32>
    %35 = vector.broadcast %34 : vector<1x896xf32> to vector<8x896xf32>
    %36 = arith.addf %33, %35 : vector<8x896xf32>
    %cst_25 = arith.constant 0.000000e+00 : f32
    %37 = vector.broadcast %cst_25 : f32 to vector<8x896xf32>
    %38 = arith.subf %37, %36 : vector<8x896xf32>
    %39 = math.exp %38 : vector<8x896xf32>
    %cst_26 = arith.constant 1.000000e+00 : f32
    %40 = vector.broadcast %cst_26 : f32 to vector<8x896xf32>
    %41 = arith.addf %40, %39 : vector<8x896xf32>
    %42 = tpu.reciprocal %41 {approx = true} : vector<8x896xf32> -> vector<8x896xf32>
    %c0_27 = arith.constant 0 : index
    %c0_28 = arith.constant 0 : index
    %43 = vector.load %arg11[%c0_27, %c0_28] : memref<8x896xf32, #tpu.memory_space<vmem>>, vector<8x896xf32>
    tpu.vector_store %arg11[%c0_27, %c0_28], %42 {strides = array<i32>} : memref<8x896xf32, #tpu.memory_space<vmem>>, vector<8x896xf32>,
    %c0_29 = arith.constant 0 : index
    %c0_30 = arith.constant 0 : index
    %44 = vector.load %arg12[%c0_29, %c0_30] : memref<8x128xf32, #tpu.memory_space<vmem>>, vector<8x128xf32>
    tpu.vector_store %arg12[%c0_29, %c0_30], %15 {strides = array<i32>} : memref<8x128xf32, #tpu.memory_space<vmem>>, vector<8x128xf32>,
    %c0_31 = arith.constant 0 : index
    %c0_32 = arith.constant 0 : index
    %45 = vector.load %arg13[%c0_31, %c0_32] : memref<8x128xf32, #tpu.memory_space<vmem>>, vector<8x128xf32>
    tpu.vector_store %arg13[%c0_31, %c0_32], %16 {strides = array<i32>} : memref<8x128xf32, #tpu.memory_space<vmem>>, vector<8x128xf32>,
    %c0_33 = arith.constant 0 : index
    %c0_34 = arith.constant 0 : index
    %46 = vector.load %arg14[%c0_33, %c0_34] : memref<8x128xf32, #tpu.memory_space<vmem>>, vector<8x128xf32>
    tpu.vector_store %arg14[%c0_33, %c0_34], %22 {strides = array<i32>} : memref<8x128xf32, #tpu.memory_space<vmem>>, vector<8x128xf32>,
    return
  }
  func.func @transform_0(%arg0: i32) -> (i32, i32) {
    %c0_i32 = arith.constant 0 : i32
    %c0_i32_0 = arith.constant 0 : i32
    return %arg0, %c0_i32 : i32, i32
  }
  func.func @transform_1(%arg0: i32) -> (i32, i32) {
    %c0_i32 = arith.constant 0 : i32
    %c0_i32_0 = arith.constant 0 : i32
    return %arg0, %c0_i32 : i32, i32
  }
  func.func @transform_2(%arg0: i32) -> (i32, i32) {
    %c0_i32 = arith.constant 0 : i32
    %c0_i32_0 = arith.constant 0 : i32
    %c0_i32_1 = arith.constant 0 : i32
    return %c0_i32, %c0_i32_0 : i32, i32
  }
  func.func @transform_3(%arg0: i32) -> (i32, i32) {
    %c0_i32 = arith.constant 0 : i32
    %c0_i32_0 = arith.constant 0 : i32
    %c0_i32_1 = arith.constant 0 : i32
    return %c0_i32, %c0_i32_0 : i32, i32
  }
  func.func @transform_4(%arg0: i32) -> (i32, i32) {
    %c0_i32 = arith.constant 0 : i32
    %c0_i32_0 = arith.constant 0 : i32
    %c0_i32_1 = arith.constant 0 : i32
    return %c0_i32, %c0_i32_0 : i32, i32
  }
  func.func @transform_5(%arg0: i32) -> (i32, i32) {
    %c0_i32 = arith.constant 0 : i32
    %c0_i32_0 = arith.constant 0 : i32
    %c0_i32_1 = arith.constant 0 : i32
    return %c0_i32, %c0_i32_0 : i32, i32
  }
  func.func @transform_6(%arg0: i32) -> (i32, i32) {
    %c0_i32 = arith.constant 0 : i32
    %c0_i32_0 = arith.constant 0 : i32
    %c0_i32_1 = arith.constant 0 : i32
    return %c0_i32, %c0_i32_0 : i32, i32
  }
  func.func @transform_7(%arg0: i32) -> (i32, i32) {
    %c0_i32 = arith.constant 0 : i32
    %c0_i32_0 = arith.constant 0 : i32
    %c0_i32_1 = arith.constant 0 : i32
    return %c0_i32, %c0_i32_0 : i32, i32
  }
  func.func @transform_8(%arg0: i32) -> (i32, i32) {
    %c0_i32 = arith.constant 0 : i32
    %c0_i32_0 = arith.constant 0 : i32
    %c0_i32_1 = arith.constant 0 : i32
    return %c0_i32, %c0_i32_0 : i32, i32
  }
  func.func @transform_9(%arg0: i32) -> (i32, i32) {
    %c0_i32 = arith.constant 0 : i32
    %c0_i32_0 = arith.constant 0 : i32
    %c0_i32_1 = arith.constant 0 : i32
    return %c0_i32, %c0_i32_0 : i32, i32
  }
  func.func @transform_10(%arg0: i32) -> (i32, i32) {
    %c0_i32 = arith.constant 0 : i32
    %c0_i32_0 = arith.constant 0 : i32
    return %arg0, %c0_i32 : i32, i32
  }
  func.func @transform_11(%arg0: i32) -> (i32, i32) {
    %c0_i32 = arith.constant 0 : i32
    %c0_i32_0 = arith.constant 0 : i32
    return %arg0, %c0_i32 : i32, i32
  }
  func.func @transform_12(%arg0: i32) -> (i32, i32) {
    %c0_i32 = arith.constant 0 : i32
    %c0_i32_0 = arith.constant 0 : i32
    return %arg0, %c0_i32 : i32, i32
  }
  func.func @transform_13(%arg0: i32) -> (i32, i32) {
    %c0_i32 = arith.constant 0 : i32
    %c0_i32_0 = arith.constant 0 : i32
    return %arg0, %c0_i32 : i32, i32
  }
}

</mosaic_0001>

<bundles_post_ra>
// kernel: tpu_custom_call.1
= control target key start
LH: loop header
LB: loop body
LE: loop exit
PB: predicated region body
PF: predicated region fallthrough
CT: control target
= control target key end

     0   :  { %19 = vsyncpa [#allocation3], 0  ;;  %s3527_s0 = inlined_call_operand.hbm [shape: f32[8,896], index: 0, kind: input, shape index: {}]   ;;  %s3528_s1 = inlined_call_operand.hbm [shape: f32[8,128], index: 1, kind: input, shape index: {}]   ;;  %s3529_s2 = inlined_call_operand.hbm [shape: bf16[896,256], index: 2, kind: input, shape index: {}]   ;;  %s3530_s3 = inlined_call_operand.vmem [shape: f32[1,256], index: 3, kind: input, shape index: {}]   ;;  %s3531_s4 = inlined_call_operand.hbm [shape: bf16[256,256], index: 4, kind: input, shape index: {}]   ;;  %s3532_s5 = inlined_call_operand.vmem [shape: f32[1,256], index: 5, kind: input, shape index: {}]   ;;  %s3533_s6 = inlined_call_operand.hbm [shape: bf16[128,256], index: 6, kind: input, shape index: {}]   ;;  %s3534_s7 = inlined_call_operand.vmem [shape: f32[1,256], index: 7, kind: input, shape index: {}]   ;;  %s3535_s8 = inlined_call_operand.hbm [shape: bf16[256,896], index: 8, kind: input, shape index: {}]   ;;  %s3536_s9 = inlined_call_operand.vmem [shape: f32[1,896], index: 9, kind: input, shape index: {}]   ;;  %s3537_s10 = inlined_call_operand.hbm [shape: f32[8,896], index: 10, kind: output, shape index: {0}]   ;;  %s3538_s11 = inlined_call_operand.hbm [shape: f32[8,128], index: 11, kind: output, shape index: {1}]   ;;  %s3539_s12 = inlined_call_operand.hbm [shape: f32[8,128], index: 12, kind: output, shape index: {2}]   ;;  %s3540_s13 = inlined_call_operand.hbm [shape: f32[8,128], index: 13, kind: output, shape index: {3}]  }
   0x1   :  { %20 = vsyncpa [#allocation6], 0 }
   0x2   :  { %21 = vsyncpa [#allocation9], 0 }
   0x3   :  { %22 = vsyncpa [#allocation12], 0 }
   0x4   :  { %23 = vsyncpa [#allocation4], 0 }
   0x5   :  { %24 = vsyncpa [#allocation15], 0 }
   0x6   :  { %25 = vsyncpa [#allocation18], 0  ;;  %s3353_s25 = smov [#allocation5]  }
   0x7   :  { %s42_s26 = sshll.u32 %s3353_s25, 4  ;;  %s43_s26 = int_to_ptr.vmem [resolvable:$true] %s42_s26 }
   0x8   :  { %s3147_s27 = scalar_lea.vmem %s43_s26, 128  ;;  %p3152_p1 = scmp.lt.s32.totalorder %s43_s26, %s43_s26 }
   0x9   :  { %p3148_p0 = scmp.ne.s32.totalorder %s43_s26, %s3147_s27  ;;  %p3153_p2 = scmp.lt.s32.totalorder %s3147_s27, %s3147_s27 }
   0xb   :  { %p3154_p3 = por %p3153_p2, %p3152_p1 }
   0xd   :  { %p3155_p4 = pnand %p3154_p3, %p3148_p0 }
   0xf   :  { %3158 = shalt.err (!%p3155_p4)
}
  0x10   :  { %45 = dma.hbm_to_vmem [thread:$0]  %s3528_s1, 128, %s43_s26, [#allocation6]  }
  0x11   :  { %s3354_s30 = smov [#allocation8]   ;;  %s3355_s15 = smov [#allocation2]  }
  0x12   :  { %s65_s14 = sshll.u32 %s3354_s30, 4  ;;  %s32_s16 = sshll.u32 %s3355_s15, 4  ;;  %s66_s14 = int_to_ptr.vmem [resolvable:$true] %s65_s14  ;;  %s33_s16 = int_to_ptr.vmem [resolvable:$true] %s32_s16 }
  0x13   :  { %s3167_s17 = scalar_lea.vmem %s66_s14, 4096  ;;  %p3172_p6 = scmp.lt.s32.totalorder %s66_s14, %s66_s14 }
  0x14   :  { %p3168_p5 = scmp.ne.s32.totalorder %s66_s14, %s3167_s17  ;;  %p3173_p7 = scmp.lt.s32.totalorder %s3167_s17, %s3167_s17 }
  0x16   :  { %p3174_p8 = por %p3173_p7, %p3172_p6 }
  0x18   :  { %p3175_p9 = pnand %p3174_p8, %p3168_p5 }
  0x1a   :  { %3178 = shalt.err (!%p3175_p9)
}
  0x1b   :  { %s3356_s18 = smov 128   ;;  %s3357_s19 = smov 8  }
  0x1c   :  { %71 = dma.hbm_to_vmem [thread:$0]  %s3531_s4, 4096, %s66_s14, [#allocation9], %s3356_s18, %s3356_s18, %s3357_s19  }
  0x1d   :  { %s3187_s1 = scalar_lea.vmem %s33_s16, 896  ;;  %p3192_p11 = scmp.lt.s32.totalorder %s33_s16, %s33_s16 }
  0x1e   :  { %p3188_p10 = scmp.ne.s32.totalorder %s33_s16, %s3187_s1  ;;  %p3193_p12 = scmp.lt.s32.totalorder %s3187_s1, %s3187_s1 }
  0x20   :  { %p3194_p13 = por %p3193_p12, %p3192_p11 }
  0x22   :  { %p3195_p0 = pnand %p3194_p13, %p3188_p10 }
  0x24   :  { %3198 = shalt.err (!%p3195_p0)
}
  0x25   :  { %35 = dma.hbm_to_vmem [thread:$0]  %s3527_s0, 896, %s33_s16, [#allocation3]  }
  0x26   :  { %s3358_s24 = smov [#allocation7]   ;;  %s3359_s26 = smov [#allocation10]  }
  0x27   :  { %s51_s25 = sshll.u32 %s3358_s24, 4  ;;  %s79_s27 = sshll.u32 %s3359_s26, 4  ;;  %s52_s25 = int_to_ptr.vmem [resolvable:$true] %s51_s25  ;;  %s80_s27 = int_to_ptr.vmem [resolvable:$true] %s79_s27 }
  0x28   :  { %s3207_s28 = scalar_lea.vmem %s52_s25, 14336  ;;  %p3212_p2 = scmp.lt.s32.totalorder %s52_s25, %s52_s25 }
  0x29   :  { %p3208_p1 = scmp.ne.s32.totalorder %s52_s25, %s3207_s28  ;;  %p3213_p3 = scmp.lt.s32.totalorder %s3207_s28, %s3207_s28 }
  0x2b   :  { %p3214_p4 = por %p3213_p3, %p3212_p2 }
  0x2d   :  { %p3215_p5 = pnand %p3214_p4, %p3208_p1 }
  0x2f   :  { %3218 = shalt.err (!%p3215_p5)
}
  0x30   :  { %57 = dma.hbm_to_vmem [thread:$0]  %s3529_s2, 14336, %s52_s25, [#allocation6], %s3356_s18, %s3356_s18, %s3357_s19  }
  0x31   :  { %s3227_s0 = scalar_lea.vmem %s80_s27, 2048  ;;  %p3232_p7 = scmp.lt.s32.totalorder %s80_s27, %s80_s27 }
  0x32   :  { %p3228_p6 = scmp.ne.s32.totalorder %s80_s27, %s3227_s0  ;;  %p3233_p8 = scmp.lt.s32.totalorder %s3227_s0, %s3227_s0 }
  0x34   :  { %p3234_p9 = por %p3233_p8, %p3232_p7 }
  0x36   :  { %p3235_p10 = pnand %p3234_p9, %p3228_p6 }
  0x38   :  { %3238 = shalt.err (!%p3235_p10)
}
  0x39   :  { %85 = dma.hbm_to_vmem [thread:$0]  %s3533_s6, 2048, %s80_s27, [#allocation9], %s3356_s18, %s3356_s18, %s3357_s19  }
  0x3a   :  { %s3360_s15 = smov [#allocation11]  }
  0x3b   :  { %s93_s16 = sshll.u32 %s3360_s15, 4  ;;  %s94_s16 = int_to_ptr.vmem [resolvable:$true] %s93_s16 }
  0x3c   :  { %s3247_s17 = scalar_lea.vmem %s94_s16, 14336  ;;  %p3252_p12 = scmp.lt.s32.totalorder %s94_s16, %s94_s16 }
  0x3d   :  { %p3248_p11 = scmp.ne.s32.totalorder %s94_s16, %s3247_s17  ;;  %p3253_p13 = scmp.lt.s32.totalorder %s3247_s17, %s3247_s17 }
  0x3f   :  { %p3254_p0 = por %p3253_p13, %p3252_p12 }
  0x41   :  { %p3255_p1 = pnand %p3254_p0, %p3248_p11 }
  0x43   :  { %3258 = shalt.err (!%p3255_p1)
}
  0x44   :  { %s3361_s2 = smov 448   ;;  %s3362_s20 = smov 28  }
  0x45   :  { %99 = dma.hbm_to_vmem [thread:$0]  %s3535_s8, 14336, %s94_s16, [#allocation12], %s3361_s2, %s3361_s2, %s3362_s20  }
  0x46   :  { %3339 = dma.done.wait [#allocation3], 896  }
  0x47   :  { %3340 = vsyncadd [#allocation3], 4294966400 }
  0x48   :  { %3341 = dma.done.wait [#allocation6], 14464  }
  0x49   :  { %3342 = vsyncadd [#allocation6], 4294952832 }
  0x4a   :  { %3343 = dma.done.wait [#allocation9], 6144  }
  0x4b   :  { %3344 = vsyncadd [#allocation9], 4294961152 }
  0x4c   :  { %3345 = dma.done.wait [#allocation12], 14336  }
  0x4d   :  { %3346 = vsyncadd [#allocation12], 4294952960  ;;  %v2709_v0 = vld [vmem:[#allocation7 + $0x74] ss:$8 sps:$4 sm:$0xff]   ;;  %v2711_v1 = vld [vmem:[#allocation7 + $0x70] ss:$8 sps:$4 sm:$0xff]  }
  0x4e   :  { %819 = vmatprep.subr.bf16.mxu0 %v2709_v0  ;;  %v2712_v2 = vld [vmem:[#allocation7 + $0x174] ss:$8 sps:$4 sm:$0xff]   ;;  %v2714_v3 = vld [vmem:[#allocation7 + $0x170] ss:$8 sps:$4 sm:$0xff]   ;;  %v2715_v4 = vld [vmem:[#allocation7 + $0x64] ss:$8 sps:$4 sm:$0xff]  }
  0x4f   :  { %820 = vmatpush1.bf16.msra.mxu0 %v2711_v1  ;;  %v2717_v5 = vld [vmem:[#allocation7 + $0x60] ss:$8 sps:$4 sm:$0xff]   ;;  %860 = vmatprep.subr.bf16.mxu1 %v2712_v2  ;;  %v2718_v6 = vld [vmem:[#allocation7 + $0x164] ss:$8 sps:$4 sm:$0xff]   ;;  %v2721_v8 = vld [vmem:[#allocation7 + $0x54] ss:$8 sps:$4 sm:$0xff]  }
  0x50   :  { %861 = vmatpush1.bf16.msra.mxu1 %v2714_v3  ;;  %821 = vmatprep.subr.bf16.mxu0 %v2715_v4  ;;  %v2720_v7 = vld [vmem:[#allocation7 + $0x160] ss:$8 sps:$4 sm:$0xff]   ;;  %v2723_v9 = vld [vmem:[#allocation7 + $0x50] ss:$8 sps:$4 sm:$0xff]   ;;  %v2724_v10 = vld [vmem:[#allocation7 + $0x154] ss:$8 sps:$4 sm:$0xff]  }
  0x51   :  { %862 = vmatprep.subr.bf16.mxu1 %v2718_v6  ;;  %v2727_v11 = vld [vmem:[#allocation7 + $0x44] ss:$8 sps:$4 sm:$0xff]   ;;  %v2726_v12 = vld [vmem:[#allocation7 + $0x150] ss:$8 sps:$4 sm:$0xff]   ;;  %v2729_v14 = vld [vmem:[#allocation7 + $0x40] ss:$8 sps:$4 sm:$0xff]  }
  0x52   :  { %v2730_v13 = vld [vmem:[#allocation7 + $0x144] ss:$8 sps:$4 sm:$0xff]   ;;  %v2733_v15 = vld [vmem:[#allocation7 + $0x34] ss:$8 sps:$4 sm:$0xff]   ;;  %v2732_v16 = vld [vmem:[#allocation7 + $0x140] ss:$8 sps:$4 sm:$0xff]  }
  0x53   :  { %822 = vmatpush1.bf16.msra.mxu0 %v2717_v5  ;;  %v2736_v17 = vld [vmem:[#allocation7 + $0x134] ss:$8 sps:$4 sm:$0xff]   ;;  %v2735_v18 = vld [vmem:[#allocation7 + $0x30] ss:$8 sps:$4 sm:$0xff]   ;;  %v2739_v19 = vld [vmem:[#allocation7 + $0x24] ss:$8 sps:$4 sm:$0xff]  }
  0x54   :  { %823 = vmatprep.subr.bf16.mxu0 %v2721_v8  ;;  %863 = vmatpush1.bf16.msra.mxu1 %v2720_v7  ;;  %v2738_v20 = vld [vmem:[#allocation7 + $0x130] ss:$8 sps:$4 sm:$0xff]   ;;  %v2742_v21 = vld [vmem:[#allocation7 + $0x124] ss:$8 sps:$4 sm:$0xff]   ;;  %v2741_v22 = vld [vmem:[#allocation7 + $0x20] ss:$8 sps:$4 sm:$0xff]  }
  0x55   :  { %864 = vmatprep.subr.bf16.mxu1 %v2724_v10  ;;  %v2745_v23 = vld [vmem:[#allocation7 + $0x14] ss:$8 sps:$4 sm:$0xff]   ;;  %v2744_v24 = vld [vmem:[#allocation7 + $0x120] ss:$8 sps:$4 sm:$0xff]   ;;  %v2747_v26 = vld [vmem:[#allocation7 + $0x10] ss:$8 sps:$4 sm:$0xff]  }
  0x56   :  { %v2748_v25 = vld [vmem:[#allocation7 + $0x114] ss:$8 sps:$4 sm:$0xff]   ;;  %v2751_v27 = vld [vmem:[#allocation7 + $0x4] ss:$8 sps:$4 sm:$0xff]   ;;  %v2750_v28 = vld [vmem:[#allocation7 + $0x110] ss:$8 sps:$4 sm:$0xff]  }
  0x57   :  { %824 = vmatpush1.bf16.msra.mxu0 %v2723_v9  ;;  %v2754_v29 = vld [vmem:[#allocation7 + $0x104] ss:$8 sps:$4 sm:$0xff]   ;;  %v2753_v30 = vld [vmem:[#allocation7] ss:$8 sps:$4 sm:$0xff]   ;;  %v2757_v31 = vld [vmem:[#allocation7 + $0xf4] ss:$8 sps:$4 sm:$0xff]  }
  0x58   :  { %825 = vmatprep.subr.bf16.mxu0 %v2727_v11  ;;  %865 = vmatpush1.bf16.msra.mxu1 %v2726_v12  ;;  %v2756_v32 = vld [vmem:[#allocation7 + $0x100] ss:$8 sps:$4 sm:$0xff]   ;;  %v2760_v33 = vld [vmem:[#allocation7 + $0x1f4] ss:$8 sps:$4 sm:$0xff]   ;;  %v2759_v34 = vld [vmem:[#allocation7 + $0xf0] ss:$8 sps:$4 sm:$0xff]  }
  0x59   :  { %866 = vmatprep.subr.bf16.mxu1 %v2730_v13  ;;  %v2763_v35 = vld [vmem:[#allocation7 + $0xe4] ss:$8 sps:$4 sm:$0xff]   ;;  %v2762_v36 = vld [vmem:[#allocation7 + $0x1f0] ss:$8 sps:$4 sm:$0xff]   ;;  %v2765_v38 = vld [vmem:[#allocation7 + $0xe0] ss:$8 sps:$4 sm:$0xff]  }
  0x5a   :  { %v2766_v37 = vld [vmem:[#allocation7 + $0x1e4] ss:$8 sps:$4 sm:$0xff]   ;;  %v2769_v39 = vld [vmem:[#allocation7 + $0xd4] ss:$8 sps:$4 sm:$0xff]   ;;  %v2768_v40 = vld [vmem:[#allocation7 + $0x1e0] ss:$8 sps:$4 sm:$0xff]  }
  0x5b   :  { %826 = vmatpush1.bf16.msra.mxu0 %v2729_v14  ;;  %v2772_v41 = vld [vmem:[#allocation7 + $0x1d4] ss:$8 sps:$4 sm:$0xff]   ;;  %v2771_v42 = vld [vmem:[#allocation7 + $0xd0] ss:$8 sps:$4 sm:$0xff]   ;;  %v2775_v43 = vld [vmem:[#allocation7 + $0xc4] ss:$8 sps:$4 sm:$0xff]  }
  0x5c   :  { %827 = vmatprep.subr.bf16.mxu0 %v2733_v15  ;;  %867 = vmatpush1.bf16.msra.mxu1 %v2732_v16  ;;  %v2774_v44 = vld [vmem:[#allocation7 + $0x1d0] ss:$8 sps:$4 sm:$0xff]   ;;  %v2778_v45 = vld [vmem:[#allocation7 + $0x1c4] ss:$8 sps:$4 sm:$0xff]   ;;  %v2777_v47 = vld [vmem:[#allocation7 + $0xc0] ss:$8 sps:$4 sm:$0xff]  }
  0x5d   :  { %868 = vmatprep.subr.bf16.mxu1 %v2736_v17  ;;  %v122_v46 = vld [vmem:[#allocation2 + $0x8] sm:$0xff]  ;;  %v2781_v49 = vld [vmem:[#allocation7 + $0xb4] ss:$8 sps:$4 sm:$0xff]   ;;  %v2783_v54 = vld [vmem:[#allocation7 + $0xb0] ss:$8 sps:$4 sm:$0xff]   ;;  %v3363_v17 = vmov 0  }
  0x5e   :  { %v129_v48 = vpack.c.bf16 %v122_v46, %v122_v46  ;;  %v124_v50 = vld [vmem:[#allocation2 + $0x18] sm:$0xff]  ;;  %v2780_v51 = vld [vmem:[#allocation7 + $0x1c0] ss:$8 sps:$4 sm:$0xff]   ;;  %v2787_v55 = vld [vmem:[#allocation7 + $0xa4] ss:$8 sps:$4 sm:$0xff]  }
  0x5f   :  { %828 = vmatpush1.bf16.msra.mxu0 %v2735_v18  ;;  %v131_v52 = vpack.c.bf16 %v124_v50, %v124_v50  ;;  %v2784_v53 = vld [vmem:[#allocation7 + $0x1b4] ss:$8 sps:$4 sm:$0xff]   ;;  %v2786_v56 = vld [vmem:[#allocation7 + $0x1b0] ss:$8 sps:$4 sm:$0xff]   ;;  %v2790_v57 = vld [vmem:[#allocation7 + $0x1a4] ss:$8 sps:$4 sm:$0xff]  }
  0x60   :  { %829 = vmatprep.subr.bf16.mxu0 %v2739_v19  ;;  %869 = vmatpush1.bf16.msra.mxu1 %v2738_v20  ;;  %v2789_v58 = vld [vmem:[#allocation7 + $0xa0] ss:$8 sps:$4 sm:$0xff]   ;;  %v2793_v59 = vld [vmem:[#allocation7 + $0x94] ss:$8 sps:$4 sm:$0xff]   ;;  %v2795_v62 = vld [vmem:[#allocation7 + $0x90] ss:$8 sps:$4 sm:$0xff]  }
  0x61   :  { %870 = vmatprep.subr.bf16.mxu1 %v2742_v21  ;;  %851 = vmatprep.mubr.bf16.mxu0 %v129_v48  ;;  %v2792_v60 = vld [vmem:[#allocation7 + $0x1a0] ss:$8 sps:$4 sm:$0xff]   ;;  %v2796_v61 = vld [vmem:[#allocation7 + $0x194] ss:$8 sps:$4 sm:$0xff]   ;;  %v2799_v63 = vld [vmem:[#allocation7 + $0x84] ss:$8 sps:$4 sm:$0xff]  }
  0x62   :  { %892 = vmatprep.mubr.bf16.mxu1 %v131_v52  ;;  %v2798_v0 = vld [vmem:[#allocation7 + $0x190] ss:$8 sps:$4 sm:$0xff]   ;;  %v2801_v1 = vld [vmem:[#allocation7 + $0x80] ss:$8 sps:$4 sm:$0xff]   ;;  %v2802_v2 = vld [vmem:[#allocation7 + $0x184] ss:$8 sps:$4 sm:$0xff]  }
  0x63   :  { %830 = vmatpush1.bf16.msra.mxu0 %v2741_v22  ;;  %v2804_v3 = vld [vmem:[#allocation7 + $0x180] ss:$8 sps:$4 sm:$0xff]   ;;  %v2807_v5 = vld [vmem:[#allocation7 + $0x274] ss:$8 sps:$4 sm:$0xff]   ;;  %v2805_v9 = vld [vmem:[#allocation7 + $0x270] ss:$8 sps:$4 sm:$0xff]  }
  0x64   :  { %831 = vmatprep.subr.bf16.mxu0 %v2745_v23  ;;  %871 = vmatpush1.bf16.msra.mxu1 %v2744_v24  ;;  %v121_v4 = vld [vmem:[#allocation2] sm:$0xff]  ;;  %v123_v6 = vld [vmem:[#allocation2 + $0x10] sm:$0xff] }
  0x65   :  { %872 = vmatprep.subr.bf16.mxu1 %v2748_v25  ;;  %v128_v7 = vpack.c.bf16 %v121_v4, %v121_v4  ;;  %v2831_v8 = vld [vmem:[#allocation7 + $0x374] ss:$8 sps:$4 sm:$0xff]   ;;  %v130_v10 = vpack.c.bf16 %v123_v6, %v123_v6  ;;  %v2810_v11 = vld [vmem:[#allocation7 + $0x264] ss:$8 sps:$4 sm:$0xff]   ;;  %v2829_v12 = vld [vmem:[#allocation7 + $0x370] ss:$8 sps:$4 sm:$0xff]  }
  0x66   :  { %v2837_v13 = vld [vmem:[#allocation7 + $0x364] ss:$8 sps:$4 sm:$0xff]   ;;  %v2808_v14 = vld [vmem:[#allocation7 + $0x260] ss:$8 sps:$4 sm:$0xff]   ;;  %v2813_v15 = vld [vmem:[#allocation7 + $0x254] ss:$8 sps:$4 sm:$0xff]  }
  0x67   :  { %832 = vmatpush1.bf16.msra.mxu0 %v2747_v26  ;;  %v2835_v16 = vld [vmem:[#allocation7 + $0x360] ss:$8 sps:$4 sm:$0xff]   ;;  %v2843_v18 = vld [vmem:[#allocation7 + $0x354] ss:$8 sps:$4 sm:$0xff]   ;;  %v2811_v19 = vld [vmem:[#allocation7 + $0x250] ss:$8 sps:$4 sm:$0xff]  }
  0x68   :  { %833 = vmatprep.subr.bf16.mxu0 %v2751_v27  ;;  %873 = vmatpush1.bf16.msra.mxu1 %v2750_v28  ;;  %v2816_v20 = vld [vmem:[#allocation7 + $0x244] ss:$8 sps:$4 sm:$0xff]   ;;  %v2841_v21 = vld [vmem:[#allocation7 + $0x350] ss:$8 sps:$4 sm:$0xff]   ;;  %v2814_v23 = vld [vmem:[#allocation7 + $0x240] ss:$8 sps:$4 sm:$0xff]  }
  0x69   :  { %874 = vmatprep.subr.bf16.mxu1 %v2754_v29  ;;  %v2849_v22 = vld [vmem:[#allocation7 + $0x344] ss:$8 sps:$4 sm:$0xff]   ;;  %v2819_v24 = vld [vmem:[#allocation7 + $0x234] ss:$8 sps:$4 sm:$0xff]   ;;  %v2847_v25 = vld [vmem:[#allocation7 + $0x340] ss:$8 sps:$4 sm:$0xff]  }
  0x6a   :  { %v126_v26 = vld [vmem:[#allocation2 + $0x28] sm:$0xff]  ;;  %v2817_v27 = vld [vmem:[#allocation7 + $0x230] ss:$8 sps:$4 sm:$0xff]   ;;  %v2855_v28 = vld [vmem:[#allocation7 + $0x334] ss:$8 sps:$4 sm:$0xff]  }
  0x6b   :  { %834 = vmatpush1.bf16.msra.mxu0 %v2753_v30  ;;  %v133_v29 = vpack.c.bf16 %v126_v26, %v126_v26  ;;  %v2822_v30 = vld [vmem:[#allocation7 + $0x224] ss:$8 sps:$4 sm:$0xff]   ;;  %v2838_v48 = vld [vmem:[#allocation7 + $0x2e0] ss:$8 sps:$4 sm:$0xff]   ;;  %v2844_v50 = vld [vmem:[#allocation7 + $0x2d0] ss:$8 sps:$4 sm:$0xff]  }
  0x6c   :  { %835 = vmatprep.subr.bf16.mxu0 %v2757_v31  ;;  %875 = vmatpush1.bf16.msra.mxu1 %v2756_v32  ;;  %v2853_v31 = vld [vmem:[#allocation7 + $0x330] ss:$8 sps:$4 sm:$0xff]   ;;  %v2861_v32 = vld [vmem:[#allocation7 + $0x324] ss:$8 sps:$4 sm:$0xff]   ;;  %v2850_v52 = vld [vmem:[#allocation7 + $0x2c0] ss:$8 sps:$4 sm:$0xff]  }
  0x6d   :  { %876 = vmatprep.subr.bf16.mxu1 %v2760_v33  ;;  %v2820_v33 = vld [vmem:[#allocation7 + $0x220] ss:$8 sps:$4 sm:$0xff]   ;;  %v2840_v46 = vld [vmem:[#allocation7 + $0x2e4] ss:$8 sps:$4 sm:$0xff]   ;;  %v2883_v4 = vld [vmem:[#allocation8 + $0x50] ss:$8 sps:$4 sm:$0xff]  }
  0x6e   :  { %v2886_v6 = vld [vmem:[#allocation8 + $0x40] ss:$8 sps:$4 sm:$0xff]  }
  0x6f   :  { %836 = vmatpush2.bf16.msra.mxu0 %v2759_v34  ;;  %v2825_v34 = vld [vmem:[#allocation7 + $0x214] ss:$8 sps:$4 sm:$0xff]   ;;  %v2916_v26 = vld [vmem:[#allocation8 + $0xa0] ss:$8 sps:$4 sm:$0xff]  }
  0x70   :  { %837 = vmatprep.subr.bf16.mxu0 %v2763_v35  ;;  %877 = vmatpush2.bf16.msra.mxu1 %v2762_v36  ;;  %v2859_v35 = vld [vmem:[#allocation7 + $0x320] ss:$8 sps:$4 sm:$0xff]   ;;  %v2867_v36 = vld [vmem:[#allocation7 + $0x314] ss:$8 sps:$4 sm:$0xff]  }
  0x71   :  { %878 = vmatprep.subr.bf16.mxu1 %v2766_v37  ;;  %v2823_v37 = vld [vmem:[#allocation7 + $0x210] ss:$8 sps:$4 sm:$0xff]  }
  0x73   :  { %838 = vmatpush2.bf16.msra.mxu0 %v2765_v38  ;;  %v2828_v38 = vld [vmem:[#allocation7 + $0x204] ss:$8 sps:$4 sm:$0xff]  }
  0x74   :  { %839 = vmatprep.subr.bf16.mxu0 %v2769_v39  ;;  %879 = vmatpush2.bf16.msra.mxu1 %v2768_v40  ;;  %v2865_v39 = vld [vmem:[#allocation7 + $0x310] ss:$8 sps:$4 sm:$0xff]   ;;  %v2873_v40 = vld [vmem:[#allocation7 + $0x304] ss:$8 sps:$4 sm:$0xff]  }
  0x75   :  { %880 = vmatprep.subr.bf16.mxu1 %v2772_v41  ;;  %v2826_v41 = vld [vmem:[#allocation7 + $0x200] ss:$8 sps:$4 sm:$0xff]  }
  0x77   :  { %840 = vmatpush2.bf16.msra.mxu0 %v2771_v42  ;;  %v2834_v42 = vld [vmem:[#allocation7 + $0x2f4] ss:$8 sps:$4 sm:$0xff]  }
  0x78   :  { %841 = vmatprep.subr.bf16.mxu0 %v2775_v43  ;;  %881 = vmatpush2.bf16.msra.mxu1 %v2774_v44  ;;  %v2871_v43 = vld [vmem:[#allocation7 + $0x300] ss:$8 sps:$4 sm:$0xff]   ;;  %v127_v44 = vld [vmem:[#allocation2 + $0x30] sm:$0xff] }
  0x79   :  { %882 = vmatprep.subr.bf16.mxu1 %v2778_v45  ;;  %v2832_v45 = vld [vmem:[#allocation7 + $0x2f0] ss:$8 sps:$4 sm:$0xff]  }
  0x7b   :  { %842 = vmatpush2.bf16.msra.mxu0 %v2777_v47  ;;  %v134_v47 = vpack.c.bf16 %v127_v44, %v127_v44 }
  0x7c   :  { %843 = vmatprep.subr.bf16.mxu0 %v2781_v49  ;;  %883 = vmatpush2.bf16.msra.mxu1 %v2780_v51  ;;  %v2846_v49 = vld [vmem:[#allocation7 + $0x2d4] ss:$8 sps:$4 sm:$0xff]   ;;  %v2852_v51 = vld [vmem:[#allocation7 + $0x2c4] ss:$8 sps:$4 sm:$0xff]  }
  0x7d   :  { %884 = vmatprep.subr.bf16.mxu1 %v2784_v53  ;;  %v2858_v53 = vld [vmem:[#allocation7 + $0x2b4] ss:$8 sps:$4 sm:$0xff]  }
  0x7f   :  { %844 = vmatpush2.bf16.msra.mxu0 %v2783_v54  ;;  %v2856_v54 = vld [vmem:[#allocation7 + $0x2b0] ss:$8 sps:$4 sm:$0xff]  }
  0x80   :  { %845 = vmatprep.subr.bf16.mxu0 %v2787_v55  ;;  %885 = vmatpush2.bf16.msra.mxu1 %v2786_v56  ;;  %v2864_v55 = vld [vmem:[#allocation7 + $0x2a4] ss:$8 sps:$4 sm:$0xff]   ;;  %v2862_v56 = vld [vmem:[#allocation7 + $0x2a0] ss:$8 sps:$4 sm:$0xff]  }
  0x81   :  { %886 = vmatprep.subr.bf16.mxu1 %v2790_v57  ;;  %v2870_v57 = vld [vmem:[#allocation7 + $0x294] ss:$8 sps:$4 sm:$0xff]  }
  0x83   :  { %846 = vmatpush2.bf16.msra.mxu0 %v2789_v58  ;;  %v2868_v58 = vld [vmem:[#allocation7 + $0x290] ss:$8 sps:$4 sm:$0xff]  }
  0x84   :  { %847 = vmatprep.subr.bf16.mxu0 %v2793_v59  ;;  %887 = vmatpush2.bf16.msra.mxu1 %v2792_v60  ;;  %v2876_v59 = vld [vmem:[#allocation7 + $0x284] ss:$8 sps:$4 sm:$0xff]   ;;  %v2874_v60 = vld [vmem:[#allocation7 + $0x280] ss:$8 sps:$4 sm:$0xff]  }
  0x85   :  { %888 = vmatprep.subr.bf16.mxu1 %v2796_v61  ;;  %v125_v61 = vld [vmem:[#allocation2 + $0x20] sm:$0xff] }
  0x87   :  { %848 = vmatpush2.bf16.msra.mxu0 %v2795_v62  ;;  %v132_v62 = vpack.c.bf16 %v125_v61, %v125_v61 }
  0x88   :  { %849 = vmatprep.subr.bf16.mxu0 %v2799_v63  ;;  %889 = vmatpush2.bf16.msra.mxu1 %v2798_v0  ;;  %v2877_v63 = vld [vmem:[#allocation8 + $0x70] ss:$8 sps:$4 sm:$0xff]   ;;  %v2879_v0 = vld [vmem:[#allocation8 + $0x74] ss:$8 sps:$4 sm:$0xff]  }
  0x89   :  { %890 = vmatprep.subr.bf16.mxu1 %v2802_v2  ;;  %v2880_v2 = vld [vmem:[#allocation8 + $0x60] ss:$8 sps:$4 sm:$0xff]  }
  0x8b   :  { %850 = vmatpush2.bf16.msra.mxu0 %v2801_v1  ;;  %v2882_v1 = vld [vmem:[#allocation8 + $0x64] ss:$8 sps:$4 sm:$0xff]  }
  0x8c   :  { %901 = vmatprep.subr.bf16.mxu0 %v2807_v5  ;;  %891 = vmatpush2.bf16.msra.mxu1 %v2804_v3  ;;  %v2885_v3 = vld [vmem:[#allocation8 + $0x54] ss:$8 sps:$4 sm:$0xff]   ;;  %v2888_v5 = vld [vmem:[#allocation8 + $0x44] ss:$8 sps:$4 sm:$0xff]  }
  0x8d   :  { %942 = vmatprep.subr.bf16.mxu1 %v2831_v8  ;;  %v2889_v8 = vld [vmem:[#allocation8 + $0x30] ss:$8 sps:$4 sm:$0xff]  }
  0x8e   :  { %852 = vmatmul.mubr.bf16.vlgmr.msra.gmra.mxu0 %v128_v7  ;;  %v2891_v7 = vld [vmem:[#allocation8 + $0x34] ss:$8 sps:$4 sm:$0xff]  }
  0x8f   :  { %902 = vmatpush1.bf16.msra.mxu0 %v2805_v9  ;;  %893 = vmatmul.mubr.bf16.vlgmr.msra.gmra.mxu1 %v130_v10  ;;  %v2894_v9 = vld [vmem:[#allocation8 + $0x24] ss:$8 sps:$4 sm:$0xff]   ;;  %v2892_v10 = vld [vmem:[#allocation8 + $0x20] ss:$8 sps:$4 sm:$0xff]  }
  0x90   :  { %903 = vmatprep.subr.bf16.mxu0 %v2810_v11  ;;  %943 = vmatpush1.bf16.msra.mxu1 %v2829_v12  ;;  %v2897_v11 = vld [vmem:[#allocation8 + $0x14] ss:$8 sps:$4 sm:$0xff]   ;;  %v2895_v12 = vld [vmem:[#allocation8 + $0x10] ss:$8 sps:$4 sm:$0xff]  }
  0x91   :  { %974 = vmatprep.mubr.bf16.mxu1 %v3363_v17  ;;  %944 = vmatprep.subr.bf16.mxu1 %v2837_v13  ;;  %v2900_v13 = vld [vmem:[#allocation8 + $0x4] ss:$8 sps:$4 sm:$0xff]  }
  0x92   :  { %933 = vmatprep.mubr.bf16.mxu0 %v133_v29  ;;  %v2924_v29 = vld [vmem:[#allocation8 + $0x84] ss:$8 sps:$4 sm:$0xff]  }
  0x93   :  { %904 = vmatpush1.bf16.msra.mxu0 %v2808_v14  ;;  %v2898_v14 = vld [vmem:[#allocation8] ss:$8 sps:$4 sm:$0xff]  }
  0x94   :  { %905 = vmatprep.subr.bf16.mxu0 %v2813_v15  ;;  %945 = vmatpush1.bf16.msra.mxu1 %v2835_v16  ;;  %v2903_v15 = vld [vmem:[#allocation8 + $0xf4] ss:$8 sps:$4 sm:$0xff]   ;;  %v2901_v16 = vld [vmem:[#allocation8 + $0xf0] ss:$8 sps:$4 sm:$0xff]  }
  0x95   :  { %946 = vmatprep.subr.bf16.mxu1 %v2843_v18  ;;  %v2904_v18 = vld [vmem:[#allocation8 + $0xe0] ss:$8 sps:$4 sm:$0xff]  }
  0x97   :  { %906 = vmatpush1.bf16.msra.mxu0 %v2811_v19  ;;  %v2909_v19 = vld [vmem:[#allocation8 + $0xd4] ss:$8 sps:$4 sm:$0xff]  }
  0x98   :  { %907 = vmatprep.subr.bf16.mxu0 %v2816_v20  ;;  %947 = vmatpush1.bf16.msra.mxu1 %v2841_v21  ;;  %v2907_v20 = vld [vmem:[#allocation8 + $0xd0] ss:$8 sps:$4 sm:$0xff]   ;;  %v2912_v21 = vld [vmem:[#allocation8 + $0xc4] ss:$8 sps:$4 sm:$0xff]  }
  0x99   :  { %948 = vmatprep.subr.bf16.mxu1 %v2849_v22  ;;  %v2910_v22 = vld [vmem:[#allocation8 + $0xc0] ss:$8 sps:$4 sm:$0xff]  }
  0x9b   :  { %908 = vmatpush1.bf16.msra.mxu0 %v2814_v23  ;;  %v2915_v23 = vld [vmem:[#allocation8 + $0xb4] ss:$8 sps:$4 sm:$0xff]  }
  0x9c   :  { %909 = vmatprep.subr.bf16.mxu0 %v2819_v24  ;;  %949 = vmatpush1.bf16.msra.mxu1 %v2847_v25  ;;  %v2913_v24 = vld [vmem:[#allocation8 + $0xb0] ss:$8 sps:$4 sm:$0xff]   ;;  %v2918_v25 = vld [vmem:[#allocation8 + $0xa4] ss:$8 sps:$4 sm:$0xff]  }
  0x9d   :  { %950 = vmatprep.subr.bf16.mxu1 %v2855_v28  ;;  %v2919_v28 = vld [vmem:[#allocation8 + $0x90] ss:$8 sps:$4 sm:$0xff]  }
  0x9f   :  { %910 = vmatpush1.bf16.msra.mxu0 %v2817_v27  ;;  %v2921_v27 = vld [vmem:[#allocation8 + $0x94] ss:$8 sps:$4 sm:$0xff]  }
  0xa0   :  { %911 = vmatprep.subr.bf16.mxu0 %v2822_v30  ;;  %951 = vmatpush1.bf16.msra.mxu1 %v2853_v31  ;;  %v2922_v30 = vld [vmem:[#allocation8 + $0x80] ss:$8 sps:$4 sm:$0xff]   ;;  %v2925_v31 = vld [vmem:[#allocation10 + $0x70] ss:$8 sps:$4 sm:$0xff]  }
  0xa1   :  { %952 = vmatprep.subr.bf16.mxu1 %v2861_v32  ;;  %v2927_v32 = vld [vmem:[#allocation10 + $0x74] ss:$8 sps:$4 sm:$0xff]  }
  0xa3   :  { %912 = vmatpush1.bf16.msra.mxu0 %v2820_v33 }
  0xa4   :  { %913 = vmatprep.subr.bf16.mxu0 %v2825_v34  ;;  %953 = vmatpush1.bf16.msra.mxu1 %v2859_v35 }
  0xa5   :  { %954 = vmatprep.subr.bf16.mxu1 %v2867_v36 }
  0xa7   :  { %914 = vmatpush1.bf16.msra.mxu0 %v2823_v37 }
  0xa8   :  { %915 = vmatprep.subr.bf16.mxu0 %v2828_v38  ;;  %955 = vmatpush1.bf16.msra.mxu1 %v2865_v39 }
  0xa9   :  { %956 = vmatprep.subr.bf16.mxu1 %v2873_v40 }
  0xab   :  { %916 = vmatpush1.bf16.msra.mxu0 %v2826_v41 }
  0xac   :  { %917 = vmatprep.subr.bf16.mxu0 %v2834_v42  ;;  %957 = vmatpush1.bf16.msra.mxu1 %v2871_v43 }
  0xad   :  { %1191 = vmatprep.subr.bf16.mxu1 %v2879_v0 }
  0xaf   :  { %918 = vmatpush2.bf16.msra.mxu0 %v2832_v45  ;;  %975 = vmatmul.mubr.bf16.vlgmr.msra.gmra.mxu1 %v134_v47  ;;  %v249_v45 = vlaneseq }
  0xb0   :  { %919 = vmatprep.subr.bf16.mxu0 %v2840_v46  ;;  %1192 = vmatpush1.bf16.msra.mxu1 %v2877_v63 }
  0xb1   :  { %1193 = vmatprep.subr.bf16.mxu1 %v2882_v1  ;;  %v3467_v46 = vshrl.u32 %v249_v45, 7  ;;  %v3032_v45 = vld [vmem:[#allocation11 + $0x23c] ss:$28 sps:$4 sm:$0xff]  }
  0xb3   :  { %920 = vmatpush2.bf16.msra.mxu0 %v2838_v48  ;;  %v3470_v47 = vsub.s32 0, %v3467_v46  ;;  %v247_v48 = vld [vmem:[%s3530_s3] sm:$0x3] }
  0xb4   :  { %921 = vmatprep.subr.bf16.mxu0 %v2846_v49  ;;  %1194 = vmatpush1.bf16.msra.mxu1 %v2880_v2  ;;  %v3476_v49 = vsub.s32 1, %v3467_v46 }
  0xb5   :  { %1195 = vmatprep.subr.bf16.mxu1 %v2885_v3 }
  0xb7   :  { %922 = vmatpush2.bf16.msra.mxu0 %v2844_v50  ;;  %v252_v50 = vrot.slane %v247_v48, %v3470_v47 }
  0xb8   :  { %923 = vmatprep.subr.bf16.mxu0 %v2852_v51  ;;  %1196 = vmatpush1.bf16.msra.mxu1 %v2883_v4  ;;  %v256_v51 = vrot.slane %v247_v48, %v3476_v49  ;;  %v2930_v4 = vld [vmem:[#allocation10 + $0x64] ss:$8 sps:$4 sm:$0xff]   ;;  %v3030_v48 = vld [vmem:[#allocation11 + $0x238] ss:$28 sps:$4 sm:$0xff]  }
  0xb9   :  { %1197 = vmatprep.subr.bf16.mxu1 %v2888_v5  ;;  %v2928_v5 = vld [vmem:[#allocation10 + $0x60] ss:$8 sps:$4 sm:$0xff]  }
  0xbb   :  { %924 = vmatpush2.bf16.msra.mxu0 %v2850_v52 }
  0xbc   :  { %925 = vmatprep.subr.bf16.mxu0 %v2858_v53  ;;  %1198 = vmatpush1.bf16.msra.mxu1 %v2886_v6  ;;  %v2933_v6 = vld [vmem:[#allocation10 + $0x54] ss:$8 sps:$4 sm:$0xff]  }
  0xbd   :  { %1199 = vmatprep.subr.bf16.mxu1 %v2891_v7  ;;  %v2931_v7 = vld [vmem:[#allocation10 + $0x50] ss:$8 sps:$4 sm:$0xff]  }
  0xbf   :  { %926 = vmatpush2.bf16.msra.mxu0 %v2856_v54 }
  0xc0   :  { %927 = vmatprep.subr.bf16.mxu0 %v2864_v55  ;;  %1200 = vmatpush1.bf16.msra.mxu1 %v2889_v8  ;;  %v2936_v8 = vld [vmem:[#allocation10 + $0x44] ss:$8 sps:$4 sm:$0xff]  }
  0xc1   :  { %1201 = vmatprep.subr.bf16.mxu1 %v2894_v9  ;;  %v2934_v9 = vld [vmem:[#allocation10 + $0x40] ss:$8 sps:$4 sm:$0xff]  }
  0xc3   :  { %928 = vmatpush2.bf16.msra.mxu0 %v2862_v56 }
  0xc4   :  { %929 = vmatprep.subr.bf16.mxu0 %v2870_v57  ;;  %1202 = vmatpush1.bf16.msra.mxu1 %v2892_v10  ;;  %v2939_v10 = vld [vmem:[#allocation10 + $0x34] ss:$8 sps:$4 sm:$0xff]  }
  0xc5   :  { %1203 = vmatprep.subr.bf16.mxu1 %v2897_v11  ;;  %v2937_v11 = vld [vmem:[#allocation10 + $0x30] ss:$8 sps:$4 sm:$0xff]  }
  0xc7   :  { %930 = vmatpush2.bf16.msra.mxu0 %v2868_v58 }
  0xc8   :  { %931 = vmatprep.subr.bf16.mxu0 %v2876_v59  ;;  %1204 = vmatpush1.bf16.msra.mxu1 %v2895_v12  ;;  %v2942_v12 = vld [vmem:[#allocation10 + $0x24] ss:$8 sps:$4 sm:$0xff]  }
  0xc9   :  { %1205 = vmatprep.subr.bf16.mxu1 %v2900_v13  ;;  %v2940_v13 = vld [vmem:[#allocation10 + $0x20] ss:$8 sps:$4 sm:$0xff]  }
  0xcb   :  { %932 = vmatpush2.bf16.msra.mxu0 %v2874_v60 }
  0xcc   :  { %1206 = vmatpush1.bf16.msra.mxu1 %v2898_v14  ;;  %1347 = vmatprep.subr.bf16.mxu0 %v2927_v32  ;;  %v2945_v14 = vld [vmem:[#allocation10 + $0x14] ss:$8 sps:$4 sm:$0xff]  }
  0xcd   :  { %1207 = vmatprep.subr.bf16.mxu1 %v2903_v15  ;;  %v2943_v15 = vld [vmem:[#allocation10 + $0x10] ss:$8 sps:$4 sm:$0xff]   ;;  %v2988_v32 = vld [vmem:[#allocation11 + $0x40] ss:$28 sps:$4 sm:$0xff]  }
  0xce   :  { %934 = vmatmul.mubr.bf16.vlgmr.msra.gmra.mxu0 %v132_v62 }
  0xcf   :  { %1379 = vmatprep.mubr.bf16.mxu0 %v3363_v17  ;;  %v2906_v17 = vld [vmem:[#allocation8 + $0xe4] ss:$8 sps:$4 sm:$0xff]   ;;  %1348 = vmatpush1.bf16.msra.mxu0 %v2925_v31 }
  0xd0   :  { %1208 = vmatpush2.bf16.msra.mxu1 %v2901_v16  ;;  %1349 = vmatprep.subr.bf16.mxu0 %v2930_v4  ;;  %v2948_v16 = vld [vmem:[#allocation10 + $0x4] ss:$8 sps:$4 sm:$0xff]  }
  0xd1   :  { %1209 = vmatprep.subr.bf16.mxu1 %v2906_v17  ;;  %v2946_v17 = vld [vmem:[#allocation10] ss:$8 sps:$4 sm:$0xff]   ;;  %v2955_v4 = vld [vmem:[#allocation11 + $0x150] ss:$28 sps:$4 sm:$0xff]  }
  0xd2   :  { %v2990_v31 = vld [vmem:[#allocation11 + $0x44] ss:$28 sps:$4 sm:$0xff]  }
  0xd3   :  { %1350 = vmatpush1.bf16.msra.mxu0 %v2928_v5  ;;  %v2963_v5 = vld [vmem:[#allocation11 + $0x11c] ss:$28 sps:$4 sm:$0xff]  }
  0xd4   :  { %1210 = vmatpush2.bf16.msra.mxu1 %v2904_v18  ;;  %1351 = vmatprep.subr.bf16.mxu0 %v2933_v6  ;;  %v2951_v18 = vld [vmem:[#allocation11 + $0x18c] ss:$28 sps:$4 sm:$0xff]   ;;  %v2961_v6 = vld [vmem:[#allocation11 + $0x118] ss:$28 sps:$4 sm:$0xff]  }
  0xd5   :  { %1211 = vmatprep.subr.bf16.mxu1 %v2909_v19  ;;  %v2952_v19 = vld [vmem:[#allocation11 + $0x190] ss:$28 sps:$4 sm:$0xff]  }
  0xd7   :  { %1352 = vmatpush1.bf16.msra.mxu0 %v2931_v7  ;;  %v2969_v7 = vld [vmem:[#allocation11 + $0xe4] ss:$28 sps:$4 sm:$0xff]  }
  0xd8   :  { %1212 = vmatpush2.bf16.msra.mxu1 %v2907_v20  ;;  %1353 = vmatprep.subr.bf16.mxu0 %v2936_v8  ;;  %v2954_v20 = vld [vmem:[#allocation11 + $0x194] ss:$28 sps:$4 sm:$0xff]   ;;  %v2967_v8 = vld [vmem:[#allocation11 + $0xe0] ss:$28 sps:$4 sm:$0xff]  }
  0xd9   :  { %1213 = vmatprep.subr.bf16.mxu1 %v2912_v21  ;;  %v2960_v21 = vld [vmem:[#allocation11 + $0x15c] ss:$28 sps:$4 sm:$0xff]  }
  0xdb   :  { %1354 = vmatpush1.bf16.msra.mxu0 %v2934_v9  ;;  %v2975_v9 = vld [vmem:[#allocation11 + $0xac] ss:$28 sps:$4 sm:$0xff]  }
  0xdc   :  { %1214 = vmatpush2.bf16.msra.mxu1 %v2910_v22  ;;  %1355 = vmatprep.subr.bf16.mxu0 %v2939_v10  ;;  %v2958_v22 = vld [vmem:[#allocation11 + $0x158] ss:$28 sps:$4 sm:$0xff]   ;;  %v2973_v10 = vld [vmem:[#allocation11 + $0xa8] ss:$28 sps:$4 sm:$0xff]  }
  0xdd   :  { %1215 = vmatprep.subr.bf16.mxu1 %v2915_v23  ;;  %v2966_v23 = vld [vmem:[#allocation11 + $0x124] ss:$28 sps:$4 sm:$0xff]  }
  0xdf   :  { %1356 = vmatpush1.bf16.msra.mxu0 %v2937_v11  ;;  %v2981_v11 = vld [vmem:[#allocation11 + $0x74] ss:$28 sps:$4 sm:$0xff]  }
  0xe0   :  { %1216 = vmatpush2.bf16.msra.mxu1 %v2913_v24  ;;  %1357 = vmatprep.subr.bf16.mxu0 %v2942_v12  ;;  %v2964_v24 = vld [vmem:[#allocation11 + $0x120] ss:$28 sps:$4 sm:$0xff]   ;;  %v2979_v12 = vld [vmem:[#allocation11 + $0x70] ss:$28 sps:$4 sm:$0xff]  }
  0xe1   :  { %1217 = vmatprep.subr.bf16.mxu1 %v2918_v25  ;;  %v2972_v25 = vld [vmem:[#allocation11 + $0xec] ss:$28 sps:$4 sm:$0xff]  }
  0xe3   :  { %1358 = vmatpush1.bf16.msra.mxu0 %v2940_v13  ;;  %v2987_v13 = vld [vmem:[#allocation11 + $0x3c] ss:$28 sps:$4 sm:$0xff]  }
  0xe4   :  { %1218 = vmatpush2.bf16.msra.mxu1 %v2916_v26  ;;  %1359 = vmatprep.subr.bf16.mxu0 %v2945_v14  ;;  %v2970_v26 = vld [vmem:[#allocation11 + $0xe8] ss:$28 sps:$4 sm:$0xff]   ;;  %v2985_v14 = vld [vmem:[#allocation11 + $0x38] ss:$28 sps:$4 sm:$0xff]  }
  0xe5   :  { %1219 = vmatprep.subr.bf16.mxu1 %v2921_v27  ;;  %v2978_v27 = vld [vmem:[#allocation11 + $0xb4] ss:$28 sps:$4 sm:$0xff]  }
  0xe7   :  { %1360 = vmatpush1.bf16.msra.mxu0 %v2943_v15  ;;  %v2993_v15 = vld [vmem:[#allocation11 + $0x4] ss:$28 sps:$4 sm:$0xff]  }
  0xe8   :  { %1220 = vmatpush2.bf16.msra.mxu1 %v2919_v28  ;;  %1361 = vmatprep.subr.bf16.mxu0 %v2948_v16  ;;  %v2976_v28 = vld [vmem:[#allocation11 + $0xb0] ss:$28 sps:$4 sm:$0xff]   ;;  %v2991_v16 = vld [vmem:[#allocation11] ss:$28 sps:$4 sm:$0xff]  }
  0xe9   :  { %1221 = vmatprep.subr.bf16.mxu1 %v2924_v29  ;;  %v2984_v29 = vld [vmem:[#allocation11 + $0x7c] ss:$28 sps:$4 sm:$0xff]  }
  0xeb   :  { %1362 = vmatpush1.bf16.msra.mxu0 %v2946_v17  ;;  %v2999_v17 = vld [vmem:[#allocation11 + $0x34c] ss:$28 sps:$4 sm:$0xff]  }
  0xec   :  { %1222 = vmatpush2.bf16.msra.mxu1 %v2922_v30  ;;  %2133 = vmatprep.subr.bf16.mxu0 %v2951_v18  ;;  %v2982_v30 = vld [vmem:[#allocation11 + $0x78] ss:$28 sps:$4 sm:$0xff]   ;;  %v2997_v18 = vld [vmem:[#allocation11 + $0x348] ss:$28 sps:$4 sm:$0xff]  }
  0xed   :  { %2174 = vmatprep.subr.bf16.mxu1 %v2954_v20  ;;  %v3003_v20 = vld [vmem:[#allocation11 + $0x310] ss:$28 sps:$4 sm:$0xff]  }
 0x14e   :  { %v853_v33 = vpop.f32.mrf.mxu0 }
 0x14f   :  { %v894_v35 = vpop.f32.mrf.mxu1  ;;  %v854_v52 = vadd.f32 %v853_v33, %v252_v50  ;;  %v2996_v33 = vld [vmem:[#allocation11 + $0xc] ss:$28 sps:$4 sm:$0xff]   ;;  %v1019_v50 = vld [vmem:[%s3532_s5] sm:$0x3] }
 0x150   :  { %v855_v34 = vpop.f32.mrf.mxu0 }
 0x151   :  { %v896_v37 = vpop.f32.mrf.mxu1  ;;  %v856_v53 = vadd.f32 %v855_v34, %v256_v51  ;;  %v895_v54 = vadd.f32 %v894_v35, %v854_v52  ;;  %v2994_v34 = vld [vmem:[#allocation11 + $0x8] ss:$28 sps:$4 sm:$0xff]   ;;  %v3002_v35 = vld [vmem:[#allocation11 + $0x354] ss:$28 sps:$4 sm:$0xff]   ;;  %v1024_v51 = vrot.slane %v1019_v50, %v3470_v47  ;;  %v1028_v52 = vrot.slane %v1019_v50, %v3476_v49 }
 0x152   :  { %v857_v36 = vpop.f32.mrf.mxu0 }
 0x153   :  { %v898_v39 = vpop.f32.mrf.mxu1  ;;  %v897_v56 = vadd.f32 %v896_v37, %v856_v53  ;;  %v3000_v36 = vld [vmem:[#allocation11 + $0x350] ss:$28 sps:$4 sm:$0xff]   ;;  %v3008_v37 = vld [vmem:[#allocation11 + $0x31c] ss:$28 sps:$4 sm:$0xff]  }
 0x154   :  { %v858_v38 = vpop.f32.mrf.mxu0  ;;  %v3014_v39 = vld [vmem:[#allocation11 + $0x2e4] ss:$28 sps:$4 sm:$0xff]  }
 0x155   :  { %v899_v40 = vpop.f32.mrf.mxu1  ;;  %v3006_v38 = vld [vmem:[#allocation11 + $0x318] ss:$28 sps:$4 sm:$0xff]  }
 0x156   :  { %v3012_v40 = vld [vmem:[#allocation11 + $0x2e0] ss:$28 sps:$4 sm:$0xff]  }
 0x16f   :  { %v976_v41 = vpop.f32.mrf.mxu1 }
 0x171   :  { %v978_v42 = vpop.f32.mrf.mxu1 }
 0x173   :  { %v980_v43 = vpop.f32.mrf.mxu1 }
 0x174   :  { %v3026_v43 = vld [vmem:[#allocation11 + $0x274] ss:$28 sps:$4 sm:$0xff]  }
 0x175   :  { %v981_v44 = vpop.f32.mrf.mxu1 }
 0x176   :  { %v3024_v44 = vld [vmem:[#allocation11 + $0x270] ss:$28 sps:$4 sm:$0xff]  }
 0x18e   :  { %v935_v55 = vpop.f32.mrf.mxu0 }
 0x18f   :  { %v936_v57 = vadd.f32 %v935_v55, %v895_v54 }
 0x190   :  { %v937_v58 = vpop.f32.mrf.mxu0 }
 0x191   :  { %v977_v59 = vadd.f32 %v976_v41, %v936_v57  ;;  %v938_v60 = vadd.f32 %v937_v58, %v897_v56  ;;  %v3020_v41 = vld [vmem:[#allocation11 + $0x2ac] ss:$28 sps:$4 sm:$0xff]  }
 0x192   :  { %v939_v61 = vpop.f32.mrf.mxu0 }
 0x193   :  { %v979_v62 = vadd.f32 %v978_v42, %v938_v60  ;;  %v983_v63 = vmax.f32 %v977_v59, 0.0  ;;  %v3018_v42 = vld [vmem:[#allocation11 + $0x2a8] ss:$28 sps:$4 sm:$0xff]   ;;  %v1235_v61 = vld [vmem:[#allocation5] sm:$0xff] }
 0x194   :  { %v940_v0 = vpop.f32.mrf.mxu0 }
 0x195   :  { %v984_v1 = vmax.f32 %v979_v62, 0.0  ;;  %v985_v3 = vpack.c.bf16 %v983_v63, %v983_v63 }
 0x197   :  { %v986_v2 = vpack.c.bf16 %v984_v1, %v984_v1  ;;  %v2949_v1 = vld [vmem:[#allocation11 + $0x188] ss:$28 sps:$4 sm:$0xff]  }
 0x199   :  { %1223 = vmatprep.mubr.bf16.mxu1 %v986_v2 }
 0x19a   :  { %1224 = vmatmul.mubr.bf16.vlgmr.msra.gmra.mxu1 %v985_v3  ;;  %v2957_v3 = vld [vmem:[#allocation11 + $0x154] ss:$28 sps:$4 sm:$0xff]  }
 0x19b   :  { %2175 = vmatpush1.bf16.msra.mxu1 %v2952_v19  ;;  %v3005_v19 = vld [vmem:[#allocation11 + $0x314] ss:$28 sps:$4 sm:$0xff]  }
 0x19c   :  { %2176 = vmatprep.subr.bf16.mxu1 %v2960_v21  ;;  %v3011_v21 = vld [vmem:[#allocation11 + $0x2dc] ss:$28 sps:$4 sm:$0xff]  }
 0x19f   :  { %2177 = vmatpush1.bf16.msra.mxu1 %v2958_v22  ;;  %v3009_v22 = vld [vmem:[#allocation11 + $0x2d8] ss:$28 sps:$4 sm:$0xff]  }
 0x1a0   :  { %2178 = vmatprep.subr.bf16.mxu1 %v2966_v23  ;;  %v3017_v23 = vld [vmem:[#allocation11 + $0x2a4] ss:$28 sps:$4 sm:$0xff]  }
 0x1a3   :  { %2179 = vmatpush1.bf16.msra.mxu1 %v2964_v24  ;;  %v3015_v24 = vld [vmem:[#allocation11 + $0x2a0] ss:$28 sps:$4 sm:$0xff]  }
 0x1a4   :  { %2180 = vmatprep.subr.bf16.mxu1 %v2972_v25  ;;  %v3023_v25 = vld [vmem:[#allocation11 + $0x26c] ss:$28 sps:$4 sm:$0xff]  }
 0x1a7   :  { %2181 = vmatpush1.bf16.msra.mxu1 %v2970_v26  ;;  %v3021_v26 = vld [vmem:[#allocation11 + $0x268] ss:$28 sps:$4 sm:$0xff]  }
 0x1a8   :  { %2182 = vmatprep.subr.bf16.mxu1 %v2978_v27  ;;  %v3029_v27 = vld [vmem:[#allocation11 + $0x234] ss:$28 sps:$4 sm:$0xff]  }
 0x1ab   :  { %2183 = vmatpush1.bf16.msra.mxu1 %v2976_v28  ;;  %v3027_v28 = vld [vmem:[#allocation11 + $0x230] ss:$28 sps:$4 sm:$0xff]  }
 0x1ac   :  { %2184 = vmatprep.subr.bf16.mxu1 %v2984_v29  ;;  %v3035_v29 = vld [vmem:[#allocation11 + $0x1fc] ss:$28 sps:$4 sm:$0xff]  }
 0x1af   :  { %2185 = vmatpush1.bf16.msra.mxu1 %v2982_v30  ;;  %v3038_v30 = vld [vmem:[#allocation11 + $0x204] ss:$28 sps:$4 sm:$0xff]  }
 0x1b0   :  { %2186 = vmatprep.subr.bf16.mxu1 %v2990_v31  ;;  %v3033_v31 = vld [vmem:[#allocation11 + $0x1f8] ss:$28 sps:$4 sm:$0xff]  }
 0x1b3   :  { %2187 = vmatpush1.bf16.msra.mxu1 %v2988_v32  ;;  %v3036_v32 = vld [vmem:[#allocation11 + $0x200] ss:$28 sps:$4 sm:$0xff]  }
 0x1b4   :  { %2188 = vmatprep.subr.bf16.mxu1 %v2996_v33  ;;  %v3041_v33 = vld [vmem:[#allocation11 + $0x1c4] ss:$28 sps:$4 sm:$0xff]  }
 0x1b7   :  { %2189 = vmatpush1.bf16.msra.mxu1 %v2994_v34  ;;  %v3044_v34 = vld [vmem:[#allocation11 + $0x1cc] ss:$28 sps:$4 sm:$0xff]  }
 0x1b8   :  { %2190 = vmatprep.subr.bf16.mxu1 %v3002_v35  ;;  %v3039_v35 = vld [vmem:[#allocation11 + $0x1c0] ss:$28 sps:$4 sm:$0xff]  }
 0x1bb   :  { %2191 = vmatpush2.bf16.msra.mxu1 %v3000_v36  ;;  %v3042_v36 = vld [vmem:[#allocation11 + $0x1c8] ss:$28 sps:$4 sm:$0xff]  }
 0x1bc   :  { %2192 = vmatprep.subr.bf16.mxu1 %v3008_v37  ;;  %v3047_v37 = vld [vmem:[#allocation11 + $0x19c] ss:$28 sps:$4 sm:$0xff]  }
 0x1bf   :  { %2193 = vmatpush2.bf16.msra.mxu1 %v3006_v38  ;;  %v3048_v38 = vld [vmem:[#allocation11 + $0x360] ss:$28 sps:$4 sm:$0xff]  }
 0x1c0   :  { %2194 = vmatprep.subr.bf16.mxu1 %v3014_v39  ;;  %v1255_v39 = vld [vmem:[%s3534_s7] sm:$0x3]  ;;  %s3364_s7 = smov [#allocation14]  }
 0x1c1   :  { %s2357_s22 = sshll.u32 %s3364_s7, 4  ;;  %s2358_s22 = int_to_ptr.vmem [resolvable:$true] %s2357_s22 }
 0x1c2   :  { %s3259_s23 = scalar_lea.vmem %s2358_s22, 128  ;;  %p3264_p3 = scmp.lt.s32.totalorder %s2358_s22, %s2358_s22 }
 0x1c3   :  { %2195 = vmatpush2.bf16.msra.mxu1 %v3012_v40  ;;  %v1260_v40 = vrot.slane %v1255_v39, %v3470_v47  ;;  %p3260_p2 = scmp.ne.s32.totalorder %s2358_s22, %s3259_s23  ;;  %p3265_p4 = scmp.lt.s32.totalorder %s3259_s23, %s3259_s23 }
 0x1c4   :  { %2196 = vmatprep.subr.bf16.mxu1 %v3020_v41  ;;  %v1264_v41 = vrot.slane %v1255_v39, %v3476_v49 }
 0x1c5   :  { %p3266_p5 = por %p3265_p4, %p3264_p3 }
 0x1c7   :  { %2197 = vmatpush2.bf16.msra.mxu1 %v3018_v42  ;;  %p3267_p6 = pnand %p3266_p5, %p3260_p2 }
 0x1c8   :  { %2198 = vmatprep.subr.bf16.mxu1 %v3026_v43 }
 0x1cb   :  { %2199 = vmatpush2.bf16.msra.mxu1 %v3024_v44 }
 0x1cc   :  { %2200 = vmatprep.subr.bf16.mxu1 %v3032_v45 }
 0x1cf   :  { %2201 = vmatpush2.bf16.msra.mxu1 %v3030_v48 }
 0x1d0   :  { %2202 = vmatprep.subr.bf16.mxu1 %v3038_v30  ;;  %v3097_v30 = vld [vmem:[#allocation11 + $0x278] ss:$28 sps:$4 sm:$0xff]  }
 0x1d3   :  { %2203 = vmatpush2.bf16.msra.mxu1 %v3036_v32  ;;  %v3100_v32 = vld [vmem:[#allocation11 + $0x240] ss:$28 sps:$4 sm:$0xff]  }
 0x1d4   :  { %2204 = vmatprep.subr.bf16.mxu1 %v3044_v34  ;;  %v3103_v34 = vld [vmem:[#allocation11 + $0x208] ss:$28 sps:$4 sm:$0xff]  }
 0x1d7   :  { %2205 = vmatpush2.bf16.msra.mxu1 %v3042_v36  ;;  %v3106_v36 = vld [vmem:[#allocation11 + $0x1d0] ss:$28 sps:$4 sm:$0xff]  }
 0x1d8   :  { %2672 = vmatprep.subr.bf16.mxu1 %v3048_v38 }
 0x25a   :  { %v1225_v53 = vpop.f32.mrf.mxu1 }
 0x25b   :  { %v1226_v54 = vadd.f32 %v1225_v53, %v1024_v51 }
 0x25c   :  { %v1227_v55 = vpop.f32.mrf.mxu1 }
 0x25d   :  { %2338 = vst [vmem:[#allocation14] sm:$0xff] %v1226_v54  ;;  %v1228_v56 = vadd.f32 %v1227_v55, %v1028_v52  ;;  %v3049_v55 = vld [vmem:[#allocation11 + $0x1a0] ss:$28 sps:$4 sm:$0xff]  }
 0x25e   :  { %v1229_v57 = vpop.f32.mrf.mxu1 }
 0x25f   :  { %v1232_v58 = vmul.f32 0.5, %v1228_v56  ;;  %2339 = vst [vmem:[#allocation16] sm:$0xff] %v1228_v56  ;;  %v3052_v57 = vld [vmem:[#allocation11 + $0x164] ss:$28 sps:$4 sm:$0xff]  }
 0x260   :  { %v1230_v59 = vpop.f32.mrf.mxu1 }
 0x261   :  { %v1233_v60 = vmul.f32 1.442695, %v1232_v58  ;;  %v3053_v58 = vld [vmem:[#allocation11 + $0x328] ss:$28 sps:$4 sm:$0xff]   ;;  %v3050_v59 = vld [vmem:[#allocation11 + $0x160] ss:$28 sps:$4 sm:$0xff]  }
 0x263   :  { %3109 = vpow2.f32 %v1233_v60  ;;  %v3054_v60 = vld [vmem:[#allocation11 + $0x168] ss:$28 sps:$4 sm:$0xff]  }
 0x270   :  { %v3110_v62 = vpop.eup %3109 }
 0x271   :  { %v1236_v63 = vmul.f32 %v3110_v62, %v1235_v61  ;;  %v3057_v61 = vld [vmem:[#allocation11 + $0x12c] ss:$28 sps:$4 sm:$0xff]  }
 0x272   :  { %v3058_v62 = vld [vmem:[#allocation11 + $0x2f0] ss:$28 sps:$4 sm:$0xff]  }
 0x273   :  { %v1237_v0 = vadd.f32 %v1236_v63, %v1226_v54  ;;  %v3045_v54 = vld [vmem:[#allocation11 + $0x198] ss:$28 sps:$4 sm:$0xff]   ;;  %v3055_v63 = vld [vmem:[#allocation11 + $0x128] ss:$28 sps:$4 sm:$0xff]  }
 0x275   :  { %v1238_v2 = vpack.c.bf16 %v1237_v0, %v1237_v0  ;;  %2340 = vst [vmem:[#allocation17] sm:$0xff] %v1237_v0  ;;  %v3059_v0 = vld [vmem:[#allocation11 + $0x130] ss:$28 sps:$4 sm:$0xff]  }
 0x277   :  { %1380 = vmatmul.mubr.bf16.vlgmr.msra.gmra.mxu0 %v1238_v2  ;;  %v3063_v2 = vld [vmem:[#allocation11 + $0x2b8] ss:$28 sps:$4 sm:$0xff]  }
 0x278   :  { %2134 = vmatpush1.bf16.msra.mxu0 %v2949_v1  ;;  %v3062_v1 = vld [vmem:[#allocation11 + $0xf4] ss:$28 sps:$4 sm:$0xff]  }
 0x279   :  { %2135 = vmatprep.subr.bf16.mxu0 %v2957_v3  ;;  %v3060_v3 = vld [vmem:[#allocation11 + $0xf0] ss:$28 sps:$4 sm:$0xff]  }
 0x27c   :  { %2136 = vmatpush1.bf16.msra.mxu0 %v2955_v4  ;;  %v3064_v4 = vld [vmem:[#allocation11 + $0xf8] ss:$28 sps:$4 sm:$0xff]  }
 0x27d   :  { %2137 = vmatprep.subr.bf16.mxu0 %v2963_v5  ;;  %v3067_v5 = vld [vmem:[#allocation11 + $0xbc] ss:$28 sps:$4 sm:$0xff]  }
 0x280   :  { %2138 = vmatpush1.bf16.msra.mxu0 %v2961_v6  ;;  %v3068_v6 = vld [vmem:[#allocation11 + $0x280] ss:$28 sps:$4 sm:$0xff]  }
 0x281   :  { %2139 = vmatprep.subr.bf16.mxu0 %v2969_v7  ;;  %v3065_v7 = vld [vmem:[#allocation11 + $0xb8] ss:$28 sps:$4 sm:$0xff]  }
 0x284   :  { %2140 = vmatpush1.bf16.msra.mxu0 %v2967_v8  ;;  %v3069_v8 = vld [vmem:[#allocation11 + $0xc0] ss:$28 sps:$4 sm:$0xff]  }
 0x285   :  { %2141 = vmatprep.subr.bf16.mxu0 %v2975_v9  ;;  %v3072_v9 = vld [vmem:[#allocation11 + $0x84] ss:$28 sps:$4 sm:$0xff]  }
 0x288   :  { %2142 = vmatpush1.bf16.msra.mxu0 %v2973_v10  ;;  %v3073_v10 = vld [vmem:[#allocation11 + $0x248] ss:$28 sps:$4 sm:$0xff]  }
 0x289   :  { %2143 = vmatprep.subr.bf16.mxu0 %v2981_v11  ;;  %v3070_v11 = vld [vmem:[#allocation11 + $0x80] ss:$28 sps:$4 sm:$0xff]  }
 0x28c   :  { %2144 = vmatpush1.bf16.msra.mxu0 %v2979_v12  ;;  %v3074_v12 = vld [vmem:[#allocation11 + $0x88] ss:$28 sps:$4 sm:$0xff]  }
 0x28d   :  { %2145 = vmatprep.subr.bf16.mxu0 %v2987_v13  ;;  %v3077_v13 = vld [vmem:[#allocation11 + $0x4c] ss:$28 sps:$4 sm:$0xff]  }
 0x290   :  { %2146 = vmatpush1.bf16.msra.mxu0 %v2985_v14  ;;  %v3078_v14 = vld [vmem:[#allocation11 + $0x210] ss:$28 sps:$4 sm:$0xff]  }
 0x291   :  { %2147 = vmatprep.subr.bf16.mxu0 %v2993_v15  ;;  %v3075_v15 = vld [vmem:[#allocation11 + $0x48] ss:$28 sps:$4 sm:$0xff]  }
 0x294   :  { %2148 = vmatpush1.bf16.msra.mxu0 %v2991_v16  ;;  %v3079_v16 = vld [vmem:[#allocation11 + $0x50] ss:$28 sps:$4 sm:$0xff]  }
 0x295   :  { %2149 = vmatprep.subr.bf16.mxu0 %v2999_v17  ;;  %v3082_v17 = vld [vmem:[#allocation11 + $0x14] ss:$28 sps:$4 sm:$0xff]  }
 0x298   :  { %2150 = vmatpush2.bf16.msra.mxu0 %v2997_v18  ;;  %v3083_v18 = vld [vmem:[#allocation11 + $0x1d8] ss:$28 sps:$4 sm:$0xff]  }
 0x299   :  { %2151 = vmatprep.subr.bf16.mxu0 %v3005_v19  ;;  %v3080_v19 = vld [vmem:[#allocation11 + $0x10] ss:$28 sps:$4 sm:$0xff]  }
 0x29c   :  { %2152 = vmatpush2.bf16.msra.mxu0 %v3003_v20  ;;  %v3084_v20 = vld [vmem:[#allocation11 + $0x18] ss:$28 sps:$4 sm:$0xff]  }
 0x29d   :  { %2153 = vmatprep.subr.bf16.mxu0 %v3011_v21  ;;  %v3087_v21 = vld [vmem:[#allocation11 + $0x35c] ss:$28 sps:$4 sm:$0xff]  }
 0x2a0   :  { %2154 = vmatpush2.bf16.msra.mxu0 %v3009_v22  ;;  %v3085_v22 = vld [vmem:[#allocation11 + $0x358] ss:$28 sps:$4 sm:$0xff]  }
 0x2a1   :  { %2155 = vmatprep.subr.bf16.mxu0 %v3017_v23  ;;  %v3090_v23 = vld [vmem:[#allocation11 + $0x324] ss:$28 sps:$4 sm:$0xff]  }
 0x2a4   :  { %2156 = vmatpush2.bf16.msra.mxu0 %v3015_v24  ;;  %v3088_v24 = vld [vmem:[#allocation11 + $0x320] ss:$28 sps:$4 sm:$0xff]  }
 0x2a5   :  { %2157 = vmatprep.subr.bf16.mxu0 %v3023_v25  ;;  %v3093_v25 = vld [vmem:[#allocation11 + $0x2ec] ss:$28 sps:$4 sm:$0xff]  }
 0x2a8   :  { %2158 = vmatpush2.bf16.msra.mxu0 %v3021_v26  ;;  %v3091_v26 = vld [vmem:[#allocation11 + $0x2e8] ss:$28 sps:$4 sm:$0xff]  }
 0x2a9   :  { %2159 = vmatprep.subr.bf16.mxu0 %v3029_v27  ;;  %v3096_v27 = vld [vmem:[#allocation11 + $0x2b4] ss:$28 sps:$4 sm:$0xff]  }
 0x2ac   :  { %2160 = vmatpush2.bf16.msra.mxu0 %v3027_v28  ;;  %v3094_v28 = vld [vmem:[#allocation11 + $0x2b0] ss:$28 sps:$4 sm:$0xff]  }
 0x2ad   :  { %2161 = vmatprep.subr.bf16.mxu0 %v3035_v29  ;;  %v3099_v29 = vld [vmem:[#allocation11 + $0x27c] ss:$28 sps:$4 sm:$0xff]  }
 0x2b0   :  { %2162 = vmatpush2.bf16.msra.mxu0 %v3033_v31  ;;  %v3102_v31 = vld [vmem:[#allocation11 + $0x244] ss:$28 sps:$4 sm:$0xff]  }
 0x2b1   :  { %2163 = vmatprep.subr.bf16.mxu0 %v3041_v33  ;;  %v3105_v33 = vld [vmem:[#allocation11 + $0x20c] ss:$28 sps:$4 sm:$0xff]  }
 0x2b4   :  { %2164 = vmatpush2.bf16.msra.mxu0 %v3039_v35  ;;  %v3108_v35 = vld [vmem:[#allocation11 + $0x1d4] ss:$28 sps:$4 sm:$0xff]  }
 0x2b5   :  { %2215 = vmatprep.subr.bf16.mxu0 %v3047_v37 }
 0x337   :  { %v1381_v42 = vpop.f32.mrf.mxu0 }
 0x338   :  { %v1382_v43 = vadd.f32 %v1381_v42, %v1260_v40 }
 0x339   :  { %v1383_v44 = vpop.f32.mrf.mxu0 }
 0x33a   :  { %v1384_v45 = vadd.f32 %v1383_v44, %v1264_v41  ;;  %v1388_v48 = vmax.f32 %v1382_v43, 0.0 }
 0x33b   :  { %v1385_v50 = vpop.f32.mrf.mxu0 }
 0x33c   :  { %v1389_v51 = vmax.f32 %v1384_v45, 0.0  ;;  %v3490_v56 = vpack.c.bf16 %v1388_v48, %v1388_v48 }
 0x33d   :  { %v1386_v52 = vpop.f32.mrf.mxu0 }
 0x33e   :  { %v1391_v53 = vpack.c.bf16 %v1389_v51, %v1389_v51 }
 0x340   :  { %2165 = vmatprep.mubr.bf16.mxu0 %v1391_v53  ;;  %2206 = vmatprep.mubr.bf16.mxu1 %v1391_v53 }
 0x341   :  { %2166 = vmatmul.mubr.bf16.vlgmr.msra.gmra.mxu0 %v3490_v56  ;;  %2207 = vmatmul.mubr.bf16.vlgmr.msra.gmra.mxu1 %v3490_v56 }
 0x342   :  { %2216 = vmatpush1.bf16.msra.mxu0 %v3045_v54  ;;  %2673 = vmatpush3.bf16.msra.mxu1 %v3049_v55 }
 0x343   :  { %2247 = vmatprep.mubr.bf16.mxu0 %v1391_v53  ;;  %2288 = vmatprep.mubr.bf16.mxu1 %v1391_v53 }
 0x344   :  { %2217 = vmatprep.subr.bf16.mxu0 %v3052_v57  ;;  %2674 = vmatprep.subr.bf16.mxu1 %v3053_v58 }
 0x346   :  { %2218 = vmatpush1.bf16.msra.mxu0 %v3050_v59  ;;  %2675 = vmatpush3.bf16.msra.mxu1 %v3054_v60 }
 0x347   :  { %2219 = vmatprep.subr.bf16.mxu0 %v3057_v61  ;;  %2676 = vmatprep.subr.bf16.mxu1 %v3058_v62 }
 0x34a   :  { %2220 = vmatpush1.bf16.msra.mxu0 %v3055_v63  ;;  %2677 = vmatpush3.bf16.msra.mxu1 %v3059_v0 }
 0x34b   :  { %2221 = vmatprep.subr.bf16.mxu0 %v3062_v1  ;;  %2678 = vmatprep.subr.bf16.mxu1 %v3063_v2 }
 0x34e   :  { %2222 = vmatpush1.bf16.msra.mxu0 %v3060_v3  ;;  %2679 = vmatpush3.bf16.msra.mxu1 %v3064_v4 }
 0x34f   :  { %2223 = vmatprep.subr.bf16.mxu0 %v3067_v5  ;;  %2680 = vmatprep.subr.bf16.mxu1 %v3068_v6 }
 0x352   :  { %2224 = vmatpush1.bf16.msra.mxu0 %v3065_v7  ;;  %2681 = vmatpush3.bf16.msra.mxu1 %v3069_v8 }
 0x353   :  { %2225 = vmatprep.subr.bf16.mxu0 %v3072_v9  ;;  %2682 = vmatprep.subr.bf16.mxu1 %v3073_v10 }
 0x356   :  { %2226 = vmatpush1.bf16.msra.mxu0 %v3070_v11  ;;  %2683 = vmatpush3.bf16.msra.mxu1 %v3074_v12 }
 0x357   :  { %2227 = vmatprep.subr.bf16.mxu0 %v3077_v13  ;;  %2684 = vmatprep.subr.bf16.mxu1 %v3078_v14 }
 0x35a   :  { %2228 = vmatpush1.bf16.msra.mxu0 %v3075_v15  ;;  %2685 = vmatpush3.bf16.msra.mxu1 %v3079_v16 }
 0x35b   :  { %2229 = vmatprep.subr.bf16.mxu0 %v3082_v17  ;;  %2686 = vmatprep.subr.bf16.mxu1 %v3083_v18 }
 0x35e   :  { %2230 = vmatpush1.bf16.msra.mxu0 %v3080_v19  ;;  %2687 = vmatpush3.bf16.msra.mxu1 %v3084_v20 }
 0x35f   :  { %2231 = vmatprep.subr.bf16.mxu0 %v3087_v21 }
 0x361   :  { %2289 = vmatmul.mubr.bf16.vlgmr.msra.gmra.mxu1 %v3490_v56 }
 0x362   :  { %2232 = vmatpush2.bf16.msra.mxu0 %v3085_v22 }
 0x363   :  { %2233 = vmatprep.subr.bf16.mxu0 %v3090_v23 }
 0x366   :  { %2234 = vmatpush2.bf16.msra.mxu0 %v3088_v24 }
 0x367   :  { %2235 = vmatprep.subr.bf16.mxu0 %v3093_v25 }
 0x36a   :  { %2236 = vmatpush2.bf16.msra.mxu0 %v3091_v26 }
 0x36b   :  { %2237 = vmatprep.subr.bf16.mxu0 %v3096_v27 }
 0x36e   :  { %2238 = vmatpush2.bf16.msra.mxu0 %v3094_v28 }
 0x36f   :  { %2239 = vmatprep.subr.bf16.mxu0 %v3099_v29 }
 0x372   :  { %2240 = vmatpush2.bf16.msra.mxu0 %v3097_v30 }
 0x373   :  { %2241 = vmatprep.subr.bf16.mxu0 %v3102_v31 }
 0x376   :  { %2242 = vmatpush2.bf16.msra.mxu0 %v3100_v32 }
 0x377   :  { %2243 = vmatprep.subr.bf16.mxu0 %v3105_v33 }
 0x37a   :  { %2244 = vmatpush2.bf16.msra.mxu0 %v3103_v34 }
 0x37b   :  { %2245 = vmatprep.subr.bf16.mxu0 %v3108_v35 }
 0x37e   :  { %2246 = vmatpush2.bf16.msra.mxu0 %v3106_v36 }
 0x381   :  { %2248 = vmatmul.mubr.bf16.vlgmr.msra.gmra.mxu0 %v3490_v56 }
 0x382   :  { %3270 = shalt.err (!%p3267_p6)
}
 0x383   :  { %2360 = dma.vmem_to_hbm [thread:$0]  %s2358_s22, 128, %s3538_s11, [#allocation15]  }
 0x384   :  { %s3365_s26 = smov [#allocation16]   ;;  %s3366_s28 = smov [#allocation17]  }
 0x385   :  { %s2367_s27 = sshll.u32 %s3365_s26, 4  ;;  %s2377_s4 = sshll.u32 %s3366_s28, 4  ;;  %s2368_s27 = int_to_ptr.vmem [resolvable:$true] %s2367_s27  ;;  %s2378_s4 = int_to_ptr.vmem [resolvable:$true] %s2377_s4 }
 0x386   :  { %s3279_s29 = scalar_lea.vmem %s2368_s27, 128  ;;  %p3284_p8 = scmp.lt.s32.totalorder %s2368_s27, %s2368_s27 }
 0x387   :  { %p3280_p7 = scmp.ne.s32.totalorder %s2368_s27, %s3279_s29  ;;  %p3285_p9 = scmp.lt.s32.totalorder %s3279_s29, %s3279_s29 }
 0x389   :  { %p3286_p10 = por %p3285_p9, %p3284_p8 }
 0x38b   :  { %p3287_p11 = pnand %p3286_p10, %p3280_p7 }
 0x38d   :  { %3290 = shalt.err (!%p3287_p11)
}
 0x38e   :  { %2370 = dma.vmem_to_hbm [thread:$0]  %s2368_s27, 128, %s3539_s12, [#allocation15]  }
 0x38f   :  { %s3299_s14 = scalar_lea.vmem %s2378_s4, 128  ;;  %p3304_p13 = scmp.lt.s32.totalorder %s2378_s4, %s2378_s4 }
 0x390   :  { %p3300_p12 = scmp.ne.s32.totalorder %s2378_s4, %s3299_s14  ;;  %p3305_p0 = scmp.lt.s32.totalorder %s3299_s14, %s3299_s14 }
 0x392   :  { %p3306_p1 = por %p3305_p0, %p3304_p13 }
 0x394   :  { %p3307_p2 = pnand %p3306_p1, %p3300_p12 }
 0x396   :  { %3310 = shalt.err (!%p3307_p2)
}
 0x397   :  { %2380 = dma.vmem_to_hbm [thread:$0]  %s2378_s4, 128, %s3540_s13, [#allocation18]   ;;  %v1532_v37 = vsub.s32 2, %v3467_v46  ;;  %v3509_v38 = vld [vmem:[%s3536_s9] sm:$0xff]  ;;  %v1536_v39 = vsub.s32 3, %v3467_v46  ;;  %v1548_v9 = vsub.s32 6, %v3467_v46 }
 0x398   :  { %v1525_v40 = vrot.slane %v3509_v38, %v3470_v47  ;;  %v1529_v42 = vrot.slane %v3509_v38, %v3476_v49  ;;  %v1540_v25 = vsub.s32 4, %v3467_v46  ;;  %v1544_v26 = vsub.s32 5, %v3467_v46  ;;  %s3367_s9 = smov [#allocation13]  }
 0x399   :  { %v1533_v41 = vrot.slane %v3509_v38, %v1532_v37  ;;  %v1537_v43 = vrot.slane %v3509_v38, %v1536_v39  ;;  %v1549_v11 = vrot.slane %v3509_v38, %v1548_v9  ;;  %s2347_s12 = sshll.u32 %s3367_s9, 4  ;;  %s2348_s12 = int_to_ptr.vmem [resolvable:$true] %s2347_s12 }
 0x39a   :  { %v1541_v27 = vrot.slane %v3509_v38, %v1540_v25  ;;  %v1545_v28 = vrot.slane %v3509_v38, %v1544_v26  ;;  %s3319_s13 = scalar_lea.vmem %s2348_s12, 896  ;;  %p3324_p4 = scmp.lt.s32.totalorder %s2348_s12, %s2348_s12 }
 0x39b   :  { %p3320_p3 = scmp.ne.s32.totalorder %s2348_s12, %s3319_s13  ;;  %p3325_p5 = scmp.lt.s32.totalorder %s3319_s13, %s3319_s13 }
 0x39d   :  { %p3326_p6 = por %p3325_p5, %p3324_p4 }
 0x39f   :  { %p3327_p7 = pnand %p3326_p6, %p3320_p3 }
 0x401   :  { %v2167_v44 = vpop.f32.mrf.mxu0  ;;  %v2208_v45 = vpop.f32.mrf.mxu1 }
 0x402   :  { %v2168_v48 = vadd.f32 %v2167_v44, %v1525_v40  ;;  %v2209_v50 = vadd.f32 %v2208_v45, %v1533_v41 }
 0x403   :  { %v2169_v51 = vpop.f32.mrf.mxu0  ;;  %v2210_v52 = vpop.f32.mrf.mxu1 }
 0x404   :  { %v2296_v53 = vsub.f32 0.0, %v2168_v48  ;;  %v2298_v54 = vsub.f32 0.0, %v2209_v50  ;;  %v2170_v55 = vadd.f32 %v2169_v51, %v1529_v42  ;;  %v2211_v56 = vadd.f32 %v2210_v52, %v1537_v43 }
 0x405   :  { %v2171_v57 = vpop.f32.mrf.mxu0  ;;  %v2212_v58 = vpop.f32.mrf.mxu1 }
 0x406   :  { %v2303_v47 = vmul.f32 1.442695, %v2296_v53  ;;  %v2307_v59 = vmul.f32 1.442695, %v2298_v54  ;;  %v2297_v60 = vsub.f32 0.0, %v2170_v55  ;;  %v2299_v61 = vsub.f32 0.0, %v2211_v56 }
 0x407   :  { %v2172_v62 = vpop.f32.mrf.mxu0  ;;  %v2213_v49 = vpop.f32.mrf.mxu1 }
 0x408   :  { %3111 = vpow2.f32 %v2303_v47  ;;  %v2305_v63 = vmul.f32 1.442695, %v2297_v60  ;;  %v2309_v0 = vmul.f32 1.442695, %v2299_v61 }
 0x409   :  { %3113 = vpow2.f32 %v2307_v59 }
 0x40a   :  { %3115 = vpow2.f32 %v2305_v63 }
 0x40b   :  { %3117 = vpow2.f32 %v2309_v0 }
 0x415   :  { %v3112_v1 = vpop.eup %3111 }
 0x416   :  { %v3114_v2 = vpop.eup %3113  ;;  %v2317_v3 = vadd.f32 1.0, %v3112_v1 }
 0x417   :  { %v3116_v4 = vpop.eup %3115  ;;  %v2319_v5 = vadd.f32 1.0, %v3114_v2 }
 0x418   :  { %v3118_v6 = vpop.eup %3117  ;;  %3119 = vrcp.f32 %v2317_v3  ;;  %v2318_v7 = vadd.f32 1.0, %v3116_v4 }
 0x419   :  { %3121 = vrcp.f32 %v2319_v5  ;;  %v2320_v8 = vadd.f32 1.0, %v3118_v6 }
 0x41a   :  { %3123 = vrcp.f32 %v2318_v7 }
 0x41b   :  { %3125 = vrcp.f32 %v2320_v8 }
 0x421   :  { %v2688_v10 = vpop.f32.mrf.mxu1 }
 0x423   :  { %v2689_v12 = vpop.f32.mrf.mxu1 }
 0x424   :  { %v2690_v13 = vadd.f32 %v2689_v12, %v2688_v10 }
 0x425   :  { %v3120_v14 = vpop.eup %3119  ;;  %v2691_v15 = vpop.f32.mrf.mxu1 }
 0x426   :  { %v3122_v16 = vpop.eup %3121  ;;  %2331 = vst [vmem:[#allocation13] sm:$0xff] %v3120_v14  ;;  %v2291_v17 = vadd.f32 %v2690_v13, %v1549_v11 }
 0x427   :  { %v3124_v18 = vpop.eup %3123  ;;  %2333 = vst [vmem:[#allocation13 + $0x10] sm:$0xff] %v3122_v16  ;;  %v2692_v19 = vpop.f32.mrf.mxu1 }
 0x428   :  { %v3126_v20 = vpop.eup %3125  ;;  %2332 = vst [vmem:[#allocation13 + $0x8] sm:$0xff] %v3124_v18  ;;  %v2302_v21 = vsub.f32 0.0, %v2291_v17 }
 0x429   :  { %2334 = vst [vmem:[#allocation13 + $0x18] sm:$0xff] %v3126_v20 }
 0x42a   :  { %v2315_v22 = vmul.f32 1.442695, %v2302_v21 }
 0x42c   :  { %3127 = vpow2.f32 %v2315_v22 }
 0x439   :  { %v3128_v23 = vpop.eup %3127 }
 0x43a   :  { %v2323_v24 = vadd.f32 1.0, %v3128_v23 }
 0x43c   :  { %3129 = vrcp.f32 %v2323_v24 }
 0x441   :  { %v2249_v29 = vpop.f32.mrf.mxu0 }
 0x442   :  { %v2250_v30 = vadd.f32 %v2249_v29, %v1541_v27 }
 0x443   :  { %v2251_v31 = vpop.f32.mrf.mxu0 }
 0x444   :  { %v2300_v32 = vsub.f32 0.0, %v2250_v30  ;;  %v2252_v33 = vadd.f32 %v2251_v31, %v1545_v28 }
 0x445   :  { %v2253_v34 = vpop.f32.mrf.mxu0 }
 0x446   :  { %v2311_v35 = vmul.f32 1.442695, %v2300_v32  ;;  %v2301_v36 = vsub.f32 0.0, %v2252_v33 }
 0x447   :  { %v2254_v37 = vpop.f32.mrf.mxu0 }
 0x448   :  { %3131 = vpow2.f32 %v2311_v35  ;;  %v2313_v39 = vmul.f32 1.442695, %v2301_v36 }
 0x449   :  { %v3130_v40 = vpop.eup %3129 }
 0x44a   :  { %2337 = vst [vmem:[#allocation13 + $0x30] sm:$0xff] %v3130_v40  ;;  %3133 = vpow2.f32 %v2313_v39 }
 0x455   :  { %v3132_v41 = vpop.eup %3131 }
 0x456   :  { %v2321_v46 = vadd.f32 1.0, %v3132_v41 }
 0x457   :  { %v3134_v42 = vpop.eup %3133 }
 0x458   :  { %3135 = vrcp.f32 %v2321_v46  ;;  %v2322_v43 = vadd.f32 1.0, %v3134_v42 }
 0x45a   :  { %3137 = vrcp.f32 %v2322_v43 }
 0x465   :  { %v3136_v38 = vpop.eup %3135 }
 0x466   :  { %2335 = vst [vmem:[#allocation13 + $0x20] sm:$0xff] %v3136_v38 }
 0x467   :  { %v3138_v44 = vpop.eup %3137 }
 0x468   :  { %2336 = vst [vmem:[#allocation13 + $0x28] sm:$0xff] %v3138_v44 }
 0x469   :  { %3330 = shalt.err (!%p3327_p7)
}
 0x46a   :  { %2350 = dma.vmem_to_hbm [thread:$0]  %s2348_s12, 896, %s3537_s10, [#allocation4]  }
 0x46b   :  { %3347 = dma.done.wait [#allocation4], 896  }
 0x46c   :  { %3348 = vsyncadd [#allocation4], 4294966400 }
 0x46d   :  { %3349 = dma.done.wait [#allocation15], 256  }
 0x46e   :  { %3350 = vsyncadd [#allocation15], 4294967040 }
 0x46f   :  { %3351 = dma.done.wait [#allocation18], 128  }
 0x470   :  { %3352 = vsyncadd [#allocation18], 4294967168 }
 0x471   :  { %2393 = vsyncpa [#allocation3], 1 }
 0x472   :  { %2394 = vsyncpa [#allocation6], 1 }
 0x473   :  { %2395 = vsyncpa [#allocation9], 1 }
 0x474   :  { %2396 = vsyncpa [#allocation12], 1 }
 0x475   :  { %2397 = vsyncpa [#allocation4], 1 }
 0x476   :  { %2398 = vsyncpa [#allocation15], 1 }
 0x477   :  { %2399 = vsyncpa [#allocation18], 1 }

</bundles_post_ra>
